<compile_context>
chip_gen: v6e
topology: v6e:2x2x1
jax: 0.10.0
libtpu: 0.0.40
codegen_flags: <defaults>
</compile_context>

<pallas_src>
import jax
import jax.numpy as jnp
from jax import lax
from jax.experimental import pallas as pl
from jax.experimental.pallas import tpu as pltpu

# onmt.Constants
PAD = 0
UNK = 1


def _round_up(x, m):
    return (x + m - 1) // m * m


# ---------------------------------------------------------------------------
# Pass 1: streaming row max / exp-sum over vocab tiles + copy gate.
# Grid: (kv, n_rt) -- vocab tiles OUTER (each W tile fetched once per pass),
#                     row tiles INNER.
# ---------------------------------------------------------------------------
def _stats_kernel(hidden_ref, w_ref, b_ref, wc_ref, bc_ref,
                  m_ref, l_ref, copy_ref,
                  m_scr, l_scr, copy_scr):
    k = pl.program_id(0)      # vocab tile (outer)
    i = pl.program_id(1)      # row tile (inner)

    h = hidden_ref[...]                                           # (tm, H), native dtype
    logits = jnp.dot(h, w_ref[...], preferred_element_type=jnp.float32)
    logits = logits + b_ref[...].astype(jnp.float32)              # (tm, tv), -inf at masked cols

    @pl.when(k == 0)
    def _init():
        tm_rows = m_scr.shape[1]
        m_scr[i] = jnp.full((tm_rows, 1), -jnp.inf, jnp.float32)
        l_scr[i] = jnp.zeros((tm_rows, 1), jnp.float32)
        # Copy gate on the VPU (elementwise mul + lane reduce), once per row tile.
        gate = jnp.sum(h.astype(jnp.float32) * wc_ref[...].astype(jnp.float32),
                       axis=-1, keepdims=True)
        copy_scr[i] = jax.nn.sigmoid(gate + bc_ref[...].astype(jnp.float32))

    m_prev = m_scr[i]
    m_new = jnp.maximum(m_prev, jnp.max(logits, axis=-1, keepdims=True))
    l_new = (l_scr[i] * jnp.exp(m_prev - m_new)
             + jnp.sum(jnp.exp(logits - m_new), axis=-1, keepdims=True))
    m_scr[i] = m_new
    l_scr[i] = l_new

    # The (tm, 1) output blocks follow the (inner) row axis, so their block
    # index changes every grid step; write the current running values on every
    # visit so every write-back carries valid data.  The final visit
    # (k == kv - 1) holds the finished statistics.
    m_ref[...] = m_new
    l_ref[...] = l_new
    copy_ref[...] = copy_scr[i]


# ---------------------------------------------------------------------------
# Pass 2: recompute logits tile, normalise, mix with (1 - copy), store.
# Grid: (kv, n_rt) -- same order, W fetched once per vocab tile.
# ---------------------------------------------------------------------------
def _emit_kernel(hidden_ref, w_ref, b_ref, m_ref, scale_ref, out_ref):
    logits = jnp.dot(hidden_ref[...], w_ref[...],
                     preferred_element_type=jnp.float32)
    logits = logits + b_ref[...].astype(jnp.float32)
    out_ref[...] = (jnp.exp(logits - m_ref[...])
                    * scale_ref[...]).astype(out_ref.dtype)


def copy_generator(hidden, attn, w_lin, b_lin, w_copy, b_copy, *,
                   tm=256, tv=2048, stream_dtype=None, interpret=False):
    """Forward pass of OpenNMT's CopyGenerator.

    Args:
      hidden: (N, H) decoder states, N = tgt_len * batch.
      attn:   (N, S) attention weights over the source.
      w_lin:  (H, V) generator weight (nn.Linear(H, V).weight transposed).
      b_lin:  (V,)   generator bias.
      w_copy: (H, 1) copy-gate weight (nn.Linear(H, 1).weight transposed).
      b_copy: (1,)   copy-gate bias.
      tm, tv: row / vocab tile sizes (auto-shrunk & padded as needed).
      stream_dtype: optional dtype (e.g. jnp.bfloat16) used to stream hidden and
        w_lin through the MXU; accumulation stays float32.

    Returns:
      (out_prob (N, V), mul_attn (N, S)) matching the PyTorch module.
    """
    N, H = hidden.shape
    V = w_lin.shape[1]
    out_dtype = hidden.dtype

    tm = min(tm, _round_up(N, 8))
    tv = min(tv, _round_up(V, 128))
    n_p = _round_up(N, tm)
    v_p = _round_up(V, tv)
    n_rt = n_p // tm
    kv = v_p // tv

    # Bake the UNK/PAD mask (and any vocab padding) into the bias as -inf:
    # exp(-inf - m) == 0, so the kernel does zero masking work.
    b_masked = (b_lin.astype(jnp.float32)
                .at[UNK].set(-jnp.inf)
                .at[PAD].set(-jnp.inf)).reshape(1, V)
    if v_p != V:
        w_lin = jnp.pad(w_lin, ((0, 0), (0, v_p - V)))
        b_masked = jnp.pad(b_masked, ((0, 0), (0, v_p - V)),
                           constant_values=-jnp.inf)
    hidden_p = jnp.pad(hidden, ((0, n_p - N), (0, 0))) if n_p != N else hidden

    if stream_dtype is not None:
        hidden_p = hidden_p.astype(stream_dtype)
        w_lin = w_lin.astype(stream_dtype)

    wc_row = w_copy.reshape(1, H).astype(jnp.float32)
    bc2 = b_copy.reshape(1, 1).astype(jnp.float32)

    in_bytes = jnp.dtype(hidden_p.dtype).itemsize
    out_bytes = jnp.dtype(out_dtype).itemsize
    flops = 2 * n_p * H * v_p

    def params(working_set_bytes, semantics):
        limit = int(min(max(2 * working_set_bytes, 32 << 20), 100 << 20))
        return pltpu.CompilerParams(dimension_semantics=semantics,
                                    vmem_limit_bytes=limit)

    # ------------------ pass 1: softmax statistics + copy gate ------------------
    stats_vmem = (2 * (tm * H + H * tv) * in_bytes          # hidden / W tiles, double-buffered
                  + 2 * (tv + H + 1) * 4                    # bias / gate params
                  + (6 + 3 * n_rt) * tm * 4)                # small outputs + scratch
    stats_cost = pl.CostEstimate(
        flops=flops, transcendentals=n_p * v_p,
        bytes_accessed=(kv * n_p * H + H * v_p) * in_bytes + v_p * 4 + 3 * n_p * 4)

    m_rows, l_rows, copy_rows = pl.pallas_call(
        _stats_kernel,
        out_shape=(jax.ShapeDtypeStruct((n_p, 1), jnp.float32),
                   jax.ShapeDtypeStruct((n_p, 1), jnp.float32),
                   jax.ShapeDtypeStruct((n_p, 1), jnp.float32)),
        grid_spec=pltpu.PrefetchScalarGridSpec(
            num_scalar_prefetch=0,
            grid=(kv, n_rt),
            in_specs=[
                pl.BlockSpec((tm, H), lambda k, i: (i, 0)),   # hidden rows
                pl.BlockSpec((H, tv), lambda k, i: (0, k)),   # W tile: once per k
                pl.BlockSpec((1, tv), lambda k, i: (0, k)),   # bias (-inf baked in)
                pl.BlockSpec((1, H), lambda k, i: (0, 0)),    # copy-gate weight row
                pl.BlockSpec((1, 1), lambda k, i: (0, 0)),    # copy-gate bias
            ],
            out_specs=[
                pl.BlockSpec((tm, 1), lambda k, i: (i, 0)),   # row max
                pl.BlockSpec((tm, 1), lambda k, i: (i, 0)),   # exp-sum
                pl.BlockSpec((tm, 1), lambda k, i: (i, 0)),   # copy gate
            ],
            scratch_shapes=[
                pltpu.VMEM((n_rt, tm, 1), jnp.float32),       # running max per row tile
                pltpu.VMEM((n_rt, tm, 1), jnp.float32),       # running exp-sum
                pltpu.VMEM((n_rt, tm, 1), jnp.float32),       # copy gate
            ],
        ),
        compiler_params=params(stats_vmem, ("arbitrary", "parallel")),
        cost_estimate=stats_cost,
        interpret=interpret,
    )(hidden_p, w_lin, b_masked, wc_row, bc2)

    # Exact normalisation + generator/copy mixing factor, once per row (tiny XLA op).
    scale_rows = (1.0 - copy_rows) / l_rows                   # (n_p, 1) float32

    # ------------------ pass 2: normalised output probabilities -----------------
    emit_vmem = (2 * (tm * H + H * tv) * in_bytes
                 + 2 * (tv + 2 * tm) * 4
                 + 2 * tm * tv * out_bytes)
    emit_cost = pl.CostEstimate(
        flops=flops, transcendentals=n_p * v_p,
        bytes_accessed=((kv * n_p * H + H * v_p) * in_bytes + v_p * 4
                        + 2 * n_p * 4 + n_p * v_p * out_bytes))

    out_prob = pl.pallas_call(
        _emit_kernel,
        out_shape=jax.ShapeDtypeStruct((n_p, v_p), out_dtype),
        grid_spec=pltpu.PrefetchScalarGridSpec(
            num_scalar_prefetch=0,
            grid=(kv, n_rt),
            in_specs=[
                pl.BlockSpec((tm, H), lambda k, i: (i, 0)),   # hidden rows
                pl.BlockSpec((H, tv), lambda k, i: (0, k)),   # W tile: once per k
                pl.BlockSpec((1, tv), lambda k, i: (0, k)),   # bias
                pl.BlockSpec((tm, 1), lambda k, i: (i, 0)),   # row max
                pl.BlockSpec((tm, 1), lambda k, i: (i, 0)),   # (1 - copy) / l
            ],
            out_specs=pl.BlockSpec((tm, tv), lambda k, i: (i, k)),
        ),
        compiler_params=params(emit_vmem, ("parallel", "parallel")),
        cost_estimate=emit_cost,
        interpret=interpret,
    )(hidden_p, w_lin, b_masked, m_rows, scale_rows)

    out_prob = out_prob[:N, :V]
    # mul_attn is a tiny (N, S) elementwise epilogue (S << 128 lanes), done in XLA.
    mul_attn = (attn.astype(jnp.float32) * copy_rows[:N]).astype(attn.dtype)
    return out_prob, mul_attn


def copy_generator_ref(hidden, attn, w_lin, b_lin, w_copy, b_copy):
    hp = hidden.astype(jnp.float32)
    logits = jnp.dot(hp, w_lin.astype(jnp.float32),
                     precision=lax.Precision.HIGHEST) + b_lin.astype(jnp.float32)
    logits = logits.at[:, UNK].set(-jnp.inf).at[:, PAD].set(-jnp.inf)
    prob = jax.nn.softmax(logits, axis=-1)
    copy = jax.nn.sigmoid(jnp.dot(hp, w_copy.astype(jnp.float32),
                                  precision=lax.Precision.HIGHEST)
                          + b_copy.astype(jnp.float32))
    return prob * (1.0 - copy), attn * copy


if __name__ == "__main__":
    # Small shapes consistent with the module: rnn_size = 64, vocab = 512,
    # tgt_len = 16, batch = 16 (N = 256 rows), src_len = 16.
    tgt_len, batch = 16, 16
    N, H, V, S = tgt_len * batch, 64, 512, 16

    key = jax.random.PRNGKey(0)
    k_h, k_a, k_w, k_b, k_wc, k_bc = jax.random.split(key, 6)

    hidden = jax.random.normal(k_h, (N, H), dtype=jnp.float32)
    attn = jax.nn.softmax(jax.random.normal(k_a, (N, S), dtype=jnp.float32), axis=-1)

    bound = 1.0 / (H ** 0.5)
    w_lin = jax.random.uniform(k_w, (H, V), jnp.float32, -bound, bound)
    b_lin = jax.random.uniform(k_b, (V,), jnp.float32, -bound, bound)
    w_copy = jax.random.uniform(k_wc, (H, 1), jnp.float32, -bound, bound)
    b_copy = jax.random.uniform(k_bc, (1,), jnp.float32, -bound, bound)

    # f32 path; tm=128 / tv=256 exercise both grid axes (n_rt = 2, kv = 2).
    out_prob, mul_attn = copy_generator(hidden, attn, w_lin, b_lin,
                                        w_copy, b_copy, tm=128, tv=256)
    jax.block_until_ready((out_prob, mul_attn))
    ref_prob, ref_attn = copy_generator_ref(hidden, attn, w_lin, b_lin,
                                            w_copy, b_copy)
    assert jnp.allclose(out_prob, ref_prob, atol=1e-5, rtol=2e-2), \
        float(jnp.max(jnp.abs(out_prob - ref_prob)))
    assert jnp.allclose(mul_attn, ref_attn, atol=1e-5, rtol=1e-3), \
        float(jnp.max(jnp.abs(mul_attn - ref_attn)))
    # Normalisation sanity: rows of out_prob sum to (1 - copy) (exact division).
    row_sums = jnp.sum(out_prob, axis=-1)
    copy_exact = jnp.squeeze(jax.nn.sigmoid(
        jnp.dot(hidden, w_copy, precision=lax.Precision.HIGHEST) + b_copy), -1)
    assert jnp.allclose(row_sums, 1.0 - copy_exact, atol=1e-4), \
        float(jnp.max(jnp.abs(row_sums - (1.0 - copy_exact))))

    # bf16 weight/activation streaming path (HBM-traffic option); compared
    # against the reference evaluated on the same bf16-rounded operands.
    out_bf, attn_bf = copy_generator(hidden, attn, w_lin, b_lin, w_copy, b_copy,
                                     tm=128, tv=256, stream_dtype=jnp.bfloat16)
    jax.block_until_ready((out_bf, attn_bf))
    ref_bf_prob, ref_bf_attn = copy_generator_ref(
        hidden.astype(jnp.bfloat16).astype(jnp.float32), attn,
        w_lin.astype(jnp.bfloat16).astype(jnp.float32), b_lin, w_copy, b_copy)
    assert jnp.allclose(out_bf, ref_bf_prob, atol=1e-5, rtol=2e-2), \
        float(jnp.max(jnp.abs(out_bf - ref_bf_prob)))
    assert jnp.allclose(attn_bf, ref_bf_attn, atol=1e-5, rtol=1e-3), \
        float(jnp.max(jnp.abs(attn_bf - ref_bf_attn)))

    print("KERNEL_OK")
</pallas_src>

<mosaic_0001>
module attributes {stable_mosaic.version = 11 : i64} {
  func.func @_stats_kernel(%arg0: i32, %arg1: i32, %arg2: memref<128x64xf32, #tpu.memory_space<vmem>>, %arg3: memref<64x256xf32, #tpu.memory_space<vmem>>, %arg4: memref<1x256xf32, #tpu.memory_space<vmem>>, %arg5: memref<1x64xf32, #tpu.memory_space<vmem>>, %arg6: memref<1x1xf32, #tpu.memory_space<vmem>>, %arg7: memref<128x1xf32, #tpu.memory_space<vmem>>, %arg8: memref<128x1xf32, #tpu.memory_space<vmem>>, %arg9: memref<128x1xf32, #tpu.memory_space<vmem>>, %arg10: memref<2x128x1xf32, #tpu.memory_space<vmem>>, %arg11: memref<2x128x1xf32, #tpu.memory_space<vmem>>, %arg12: memref<2x128x1xf32, #tpu.memory_space<vmem>>) attributes {dimension_semantics = [#tpu.dimension_semantics<arbitrary>, #tpu.dimension_semantics<parallel>], iteration_bounds = array<i64: 2, 2>, scalar_prefetch = 0 : i64, scratch_operands = 3 : i64, tpu.core_type = #tpu.core_type<tc>, window_params = [{transform_indices = @transform_0, window_bounds = array<i64: 128, 64>}, {transform_indices = @transform_1, window_bounds = array<i64: 64, 256>}, {transform_indices = @transform_2, window_bounds = array<i64: 1, 256>}, {pipeline_mode = #tpu.pipeline_mode<synchronous>, transform_indices = @transform_3, window_bounds = array<i64: 1, 64>}, {pipeline_mode = #tpu.pipeline_mode<synchronous>, transform_indices = @transform_4, window_bounds = array<i64: 1, 1>}, {transform_indices = @transform_5, window_bounds = array<i64: 128, 1>}, {transform_indices = @transform_6, window_bounds = array<i64: 128, 1>}, {transform_indices = @transform_7, window_bounds = array<i64: 128, 1>}]} {
    %c0 = arith.constant 0 : index
    %c0_0 = arith.constant 0 : index
    %0 = vector.load %arg2[%c0, %c0_0] : memref<128x64xf32, #tpu.memory_space<vmem>>, vector<128x64xf32>
    %c0_1 = arith.constant 0 : index
    %c0_2 = arith.constant 0 : index
    %1 = vector.load %arg3[%c0_1, %c0_2] : memref<64x256xf32, #tpu.memory_space<vmem>>, vector<64x256xf32>
    %cst = arith.constant dense<0.000000e+00> : vector<128x256xf32>
    %2 = tpu.matmul %0, %1, %cst {dimension_numbers = #tpu.dot_dimension_numbers<[1], [0], [0], [1], [0, 0, 1, 1], [], []>} : vector<128x64xf32>, vector<64x256xf32>, vector<128x256xf32> -> vector<128x256xf32>
    %c0_3 = arith.constant 0 : index
    %c0_4 = arith.constant 0 : index
    %3 = vector.load %arg4[%c0_3, %c0_4] : memref<1x256xf32, #tpu.memory_space<vmem>>, vector<1x256xf32>
    %4 = vector.broadcast %3 : vector<1x256xf32> to vector<128x256xf32>
    %5 = arith.addf %2, %4 : vector<128x256xf32>
    %c0_i32 = arith.constant 0 : i32
    %6 = arith.cmpi eq, %arg0, %c0_i32 : i32
    %7 = arith.extui %6 : i1 to i32
    %c0_i32_5 = arith.constant 0 : i32
    %8 = arith.cmpi ne, %7, %c0_i32_5 : i32
    scf.if %8 {
      %cst_24 = arith.constant 0xFF800000 : f32
      %41 = vector.broadcast %cst_24 : f32 to vector<128x1xf32>
      %42 = arith.index_cast %arg1 : i32 to index
      %c0_25 = arith.constant 0 : index
      %c0_26 = arith.constant 0 : index
      %43 = vector.load %arg10[%42, %c0_25, %c0_26] : memref<2x128x1xf32, #tpu.memory_space<vmem>>, vector<1x128x1xf32>
      %44 = vector.shape_cast %43 : vector<1x128x1xf32> to vector<128x1xf32>
      %45 = vector.shape_cast %41 : vector<128x1xf32> to vector<1x128x1xf32>
      tpu.vector_store %arg10[%42, %c0_25, %c0_26], %45 {strides = array<i32>} : memref<2x128x1xf32, #tpu.memory_space<vmem>>, vector<1x128x1xf32>,
      %cst_27 = arith.constant 0.000000e+00 : f32
      %46 = vector.broadcast %cst_27 : f32 to vector<128x1xf32>
      %47 = arith.index_cast %arg1 : i32 to index
      %c0_28 = arith.constant 0 : index
      %c0_29 = arith.constant 0 : index
      %48 = vector.load %arg11[%47, %c0_28, %c0_29] : memref<2x128x1xf32, #tpu.memory_space<vmem>>, vector<1x128x1xf32>
      %49 = vector.shape_cast %48 : vector<1x128x1xf32> to vector<128x1xf32>
      %50 = vector.shape_cast %46 : vector<128x1xf32> to vector<1x128x1xf32>
      tpu.vector_store %arg11[%47, %c0_28, %c0_29], %50 {strides = array<i32>} : memref<2x128x1xf32, #tpu.memory_space<vmem>>, vector<1x128x1xf32>,
      %c0_30 = arith.constant 0 : index
      %c0_31 = arith.constant 0 : index
      %51 = vector.load %arg5[%c0_30, %c0_31] : memref<1x64xf32, #tpu.memory_space<vmem>>, vector<1x64xf32>
      %52 = vector.broadcast %51 : vector<1x64xf32> to vector<128x64xf32>
      %53 = arith.mulf %0, %52 : vector<128x64xf32>
      %cst_32 = arith.constant dense<0.000000e+00> : vector<128xf32>
      %54 = vector.multi_reduction <add>, %53, %cst_32 [1] : vector<128x64xf32> to vector<128xf32>
      %55 = vector.shape_cast %54 : vector<128xf32> to vector<128x1xf32>
      %c0_33 = arith.constant 0 : index
      %c0_34 = arith.constant 0 : index
      %56 = vector.load %arg6[%c0_33, %c0_34] : memref<1x1xf32, #tpu.memory_space<vmem>>, vector<1x1xf32>
      %57 = vector.broadcast %56 : vector<1x1xf32> to vector<128x1xf32>
      %58 = arith.addf %55, %57 : vector<128x1xf32>
      %59 = arith.negf %58 : vector<128x1xf32>
      %60 = math.exp %59 : vector<128x1xf32>
      %cst_35 = arith.constant 1.000000e+00 : f32
      %61 = vector.broadcast %cst_35 : f32 to vector<128x1xf32>
      %62 = arith.addf %61, %60 : vector<128x1xf32>
      %63 = arith.divf %61, %62 : vector<128x1xf32>
      %64 = arith.index_cast %arg1 : i32 to index
      %c0_36 = arith.constant 0 : index
      %c0_37 = arith.constant 0 : index
      %65 = vector.load %arg12[%64, %c0_36, %c0_37] : memref<2x128x1xf32, #tpu.memory_space<vmem>>, vector<1x128x1xf32>
      %66 = vector.shape_cast %65 : vector<1x128x1xf32> to vector<128x1xf32>
      %67 = vector.shape_cast %63 : vector<128x1xf32> to vector<1x128x1xf32>
      tpu.vector_store %arg12[%64, %c0_36, %c0_37], %67 {strides = array<i32>} : memref<2x128x1xf32, #tpu.memory_space<vmem>>, vector<1x128x1xf32>,
    } else {
    }
    %9 = arith.index_cast %arg1 : i32 to index
    %c0_6 = arith.constant 0 : index
    %c0_7 = arith.constant 0 : index
    %10 = vector.load %arg10[%9, %c0_6, %c0_7] : memref<2x128x1xf32, #tpu.memory_space<vmem>>, vector<1x128x1xf32>
    %11 = vector.shape_cast %10 : vector<1x128x1xf32> to vector<128x1xf32>
    %cst_8 = arith.constant dense<0xFF800000> : vector<128xf32>
    %12 = vector.multi_reduction <maximumf>, %5, %cst_8 [1] : vector<128x256xf32> to vector<128xf32>
    %13 = vector.shape_cast %12 : vector<128xf32> to vector<128x1xf32>
    %14 = arith.maximumf %11, %13 : vector<128x1xf32>
    %15 = arith.index_cast %arg1 : i32 to index
    %c0_9 = arith.constant 0 : index
    %c0_10 = arith.constant 0 : index
    %16 = vector.load %arg11[%15, %c0_9, %c0_10] : memref<2x128x1xf32, #tpu.memory_space<vmem>>, vector<1x128x1xf32>
    %17 = vector.shape_cast %16 : vector<1x128x1xf32> to vector<128x1xf32>
    %18 = arith.subf %11, %14 : vector<128x1xf32>
    %19 = math.exp %18 : vector<128x1xf32>
    %20 = arith.mulf %17, %19 : vector<128x1xf32>
    %21 = vector.broadcast %14 : vector<128x1xf32> to vector<128x256xf32>
    %22 = arith.subf %5, %21 : vector<128x256xf32>
    %23 = math.exp %22 : vector<128x256xf32>
    %cst_11 = arith.constant dense<0.000000e+00> : vector<128xf32>
    %24 = vector.multi_reduction <add>, %23, %cst_11 [1] : vector<128x256xf32> to vector<128xf32>
    %25 = vector.shape_cast %24 : vector<128xf32> to vector<128x1xf32>
    %26 = arith.addf %20, %25 : vector<128x1xf32>
    %27 = arith.index_cast %arg1 : i32 to index
    %c0_12 = arith.constant 0 : index
    %c0_13 = arith.constant 0 : index
    %28 = vector.load %arg10[%27, %c0_12, %c0_13] : memref<2x128x1xf32, #tpu.memory_space<vmem>>, vector<1x128x1xf32>
    %29 = vector.shape_cast %28 : vector<1x128x1xf32> to vector<128x1xf32>
    %30 = vector.shape_cast %14 : vector<128x1xf32> to vector<1x128x1xf32>
    tpu.vector_store %arg10[%27, %c0_12, %c0_13], %30 {strides = array<i32>} : memref<2x128x1xf32, #tpu.memory_space<vmem>>, vector<1x128x1xf32>,
    %31 = arith.index_cast %arg1 : i32 to index
    %c0_14 = arith.constant 0 : index
    %c0_15 = arith.constant 0 : index
    %32 = vector.load %arg11[%31, %c0_14, %c0_15] : memref<2x128x1xf32, #tpu.memory_space<vmem>>, vector<1x128x1xf32>
    %33 = vector.shape_cast %32 : vector<1x128x1xf32> to vector<128x1xf32>
    %34 = vector.shape_cast %26 : vector<128x1xf32> to vector<1x128x1xf32>
    tpu.vector_store %arg11[%31, %c0_14, %c0_15], %34 {strides = array<i32>} : memref<2x128x1xf32, #tpu.memory_space<vmem>>, vector<1x128x1xf32>,
    %c0_16 = arith.constant 0 : index
    %c0_17 = arith.constant 0 : index
    %35 = vector.load %arg7[%c0_16, %c0_17] : memref<128x1xf32, #tpu.memory_space<vmem>>, vector<128x1xf32>
    tpu.vector_store %arg7[%c0_16, %c0_17], %14 {strides = array<i32>} : memref<128x1xf32, #tpu.memory_space<vmem>>, vector<128x1xf32>,
    %c0_18 = arith.constant 0 : index
    %c0_19 = arith.constant 0 : index
    %36 = vector.load %arg8[%c0_18, %c0_19] : memref<128x1xf32, #tpu.memory_space<vmem>>, vector<128x1xf32>
    tpu.vector_store %arg8[%c0_18, %c0_19], %26 {strides = array<i32>} : memref<128x1xf32, #tpu.memory_space<vmem>>, vector<128x1xf32>,
    %37 = arith.index_cast %arg1 : i32 to index
    %c0_20 = arith.constant 0 : index
    %c0_21 = arith.constant 0 : index
    %38 = vector.load %arg12[%37, %c0_20, %c0_21] : memref<2x128x1xf32, #tpu.memory_space<vmem>>, vector<1x128x1xf32>
    %39 = vector.shape_cast %38 : vector<1x128x1xf32> to vector<128x1xf32>
    %c0_22 = arith.constant 0 : index
    %c0_23 = arith.constant 0 : index
    %40 = vector.load %arg9[%c0_22, %c0_23] : memref<128x1xf32, #tpu.memory_space<vmem>>, vector<128x1xf32>
    tpu.vector_store %arg9[%c0_22, %c0_23], %39 {strides = array<i32>} : memref<128x1xf32, #tpu.memory_space<vmem>>, vector<128x1xf32>,
    return
  }
  func.func @transform_0(%arg0: i32, %arg1: i32) -> (i32, i32) {
    %c0_i32 = arith.constant 0 : i32
    %c0_i32_0 = arith.constant 0 : i32
    return %arg1, %c0_i32 : i32, i32
  }
  func.func @transform_1(%arg0: i32, %arg1: i32) -> (i32, i32) {
    %c0_i32 = arith.constant 0 : i32
    %c0_i32_0 = arith.constant 0 : i32
    return %c0_i32, %arg0 : i32, i32
  }
  func.func @transform_2(%arg0: i32, %arg1: i32) -> (i32, i32) {
    %c0_i32 = arith.constant 0 : i32
    %c0_i32_0 = arith.constant 0 : i32
    return %c0_i32, %arg0 : i32, i32
  }
  func.func @transform_3(%arg0: i32, %arg1: i32) -> (i32, i32) {
    %c0_i32 = arith.constant 0 : i32
    %c0_i32_0 = arith.constant 0 : i32
    %c0_i32_1 = arith.constant 0 : i32
    return %c0_i32, %c0_i32_0 : i32, i32
  }
  func.func @transform_4(%arg0: i32, %arg1: i32) -> (i32, i32) {
    %c0_i32 = arith.constant 0 : i32
    %c0_i32_0 = arith.constant 0 : i32
    %c0_i32_1 = arith.constant 0 : i32
    return %c0_i32, %c0_i32_0 : i32, i32
  }
  func.func @transform_5(%arg0: i32, %arg1: i32) -> (i32, i32) {
    %c0_i32 = arith.constant 0 : i32
    %c0_i32_0 = arith.constant 0 : i32
    return %arg1, %c0_i32 : i32, i32
  }
  func.func @transform_6(%arg0: i32, %arg1: i32) -> (i32, i32) {
    %c0_i32 = arith.constant 0 : i32
    %c0_i32_0 = arith.constant 0 : i32
    return %arg1, %c0_i32 : i32, i32
  }
  func.func @transform_7(%arg0: i32, %arg1: i32) -> (i32, i32) {
    %c0_i32 = arith.constant 0 : i32
    %c0_i32_0 = arith.constant 0 : i32
    return %arg1, %c0_i32 : i32, i32
  }
}

</mosaic_0001>

<bundles_post_ra>
// kernel: tpu_custom_call.1
= control target key start
LH: loop header
LB: loop body
LE: loop exit
PB: predicated region body
PF: predicated region fallthrough
CT: control target
= control target key end

     0   :  { %s2821_s0 = inlined_call_operand.vmem [shape: f32[256,64], index: 0, kind: input, shape index: {}]   ;;  %s2822_s1 = inlined_call_operand.vmem [shape: f32[64,512], index: 1, kind: input, shape index: {}]   ;;  %s2823_s2 = inlined_call_operand.vmem [shape: f32[1,512], index: 2, kind: input, shape index: {}]   ;;  %s2824_s3 = inlined_call_operand.vmem [shape: f32[1,64], index: 3, kind: input, shape index: {}]   ;;  %s2825_s4 = inlined_call_operand.<no memory space> [shape: f32[1,1], index: 4, kind: input, shape index: {}]   ;;  %s2826_s5 = inlined_call_operand.vmem [shape: f32[256,1], index: 5, kind: output, shape index: {0}]   ;;  %s2827_s6 = inlined_call_operand.vmem [shape: f32[256,1], index: 6, kind: output, shape index: {1}]   ;;  %s2828_s7 = inlined_call_operand.vmem [shape: f32[256,1], index: 7, kind: output, shape index: {2}]  }
   0x1   :  { %v13_v0 = vstv %s2825_s4 }
   0x2   :  { %14 = vst [vmem:[#allocation5] sm:$0x1] %v13_v0 }
   0x3   :  { %s1989_s26 = smov 0   ;;  %s1991_s27 = smov 0  }
   0x4   :  { %s1993_s28 = smov 0   ;;  %s1995_s29 = smov 0  }
   0x5   :  { %s1997_s30 = smov 0   ;;  %s1999_s8 = smov 0  }
   0x6   :  { %s2001_s9 = smov 0  }
   0x7 LB: > { %s29_s4 = sadd.s32 1, %s1932_s30  ;;  %s32_s10 = sadd.s32 1, %s1936_s8  ;;  %s1940_s9 = sphi %s2001_s9, %s20_s9   ;;  %s1936_s8 = sphi %s1999_s8, %s2834_s8   ;;  %s1932_s30 = sphi %s1997_s30, %s2833_s30   ;;  %s1928_s29 = sphi %s1995_s29, %s2832_s29   ;;  %s1924_s28 = sphi %s1993_s28, %s2831_s28   ;;  %s1920_s27 = sphi %s1991_s27, %s2830_s27   ;;  %s1916_s26 = sphi %s1989_s26, %s2829_s26  }
   0x8   : > { %p30_p0 = scmp.ge.s32.totalorder %s29_s4, 2  ;;  %p72_p1 = scmp.ne.s32.totalorder %s1920_s27, %s1916_s26 }
   0x9   : > { %p73_p2 = scmp.eq.s32.totalorder %s1940_s9, 0  ;;  %s65_s12 = sadd.s32 1, %s1920_s27 }
   0xa   : > { %s2836_s4 = smov (%p30_p0, %s29_s4), 0  ;;  %s2838_s10 = smov (!%p30_p0, %s32_s10), %s1936_s8 }
   0xb   : > { %p74_p3 = por %p73_p2, %p72_p1  ;;  %p34_p4 = scmp.ge.s32.totalorder %s2838_s10, 2 }
   0xc   : > { %p1593_p6 = scmp.ge.s32.totalorder %s1940_s9, 4 }
   0xd   : > { %s2840_s10 = smov (%p34_p4, %s2838_s10), 0 }
   0xe   : > { %s62_s11 = ssub.s32 %s1936_s8, %s2840_s10  ;;  %250 = sbr.rel (%p1593_p6) target bundleno = 31 (0x1f), region = 24 }
   0xf   : > { %p63_p5 = scmp.eq.s32.totalorder %s62_s11, 0 }
  0x11   : > { %s2038_s13 = scalar_select %p63_p5, %s1920_s27, %s65_s12  }
  0x13   : > { %262 = sbr.rel (!%p74_p3) target bundleno = 31 (0x1f), region = 32  ;;  %s264_s14 = sand.u32 (%p74_p3), 1, %s1920_s27  }
  0x14   : > { %s1647_s15 = sshll.u32 (%p74_p3), %s1936_s8, 4  ;;  %s1594_s16 = sshll.u32 (%p74_p3), %s264_s14, 7 }
  0x15   : > { %s2046_s19 = scalar_lea.vmem (%p74_p3), %s2822_s1, %s1647_s15  ;;  %s266_s20 = scalar_lea.vmem (%p74_p3), [#allocation6], %s1594_s16 }
  0x16   : > { %v282_v1 = vld [vmem:[%s2046_s19] sm:$0xff] (%p74_p3)  ;;  %v284_v2 = vld [vmem:[%s2046_s19 + $0x8] sm:$0xff] (%p74_p3) }
  0x17   : > { %v286_v3 = vld [vmem:[%s2046_s19 + $0x20] sm:$0xff] (%p74_p3)  ;;  %283 = vst [vmem:[%s266_s20] sm:$0xff] (%p74_p3), %v282_v1  ;;  %285 = vst [vmem:[%s266_s20 + $0x8] sm:$0xff] (%p74_p3), %v284_v2  ;;  %v288_v4 = vld [vmem:[%s2046_s19 + $0x28] sm:$0xff] (%p74_p3) }
  0x18   : > { %287 = vst [vmem:[%s266_s20 + $0x10] sm:$0xff] %v286_v3  ;;  %v290_v5 = vld [vmem:[%s2046_s19 + $0x40] sm:$0xff]  ;;  %v292_v6 = vld [vmem:[%s2046_s19 + $0x48] sm:$0xff]  ;;  %289 = vst [vmem:[%s266_s20 + $0x18] sm:$0xff] %v288_v4 }
  0x19   : > { %291 = vst [vmem:[%s266_s20 + $0x20] sm:$0xff] %v290_v5  ;;  %293 = vst [vmem:[%s266_s20 + $0x28] sm:$0xff] %v292_v6  ;;  %v294_v7 = vld [vmem:[%s2046_s19 + $0x60] sm:$0xff]  ;;  %v296_v8 = vld [vmem:[%s2046_s19 + $0x68] sm:$0xff] }
  0x1a   : > { %v298_v9 = vld [vmem:[%s2046_s19 + $0x80] sm:$0xff]  ;;  %295 = vst [vmem:[%s266_s20 + $0x30] sm:$0xff] %v294_v7  ;;  %297 = vst [vmem:[%s266_s20 + $0x38] sm:$0xff] %v296_v8  ;;  %v300_v10 = vld [vmem:[%s2046_s19 + $0x88] sm:$0xff] }
  0x1b   : > { %299 = vst [vmem:[%s266_s20 + $0x40] sm:$0xff] %v298_v9  ;;  %v302_v11 = vld [vmem:[%s2046_s19 + $0xa0] sm:$0xff]  ;;  %v304_v12 = vld [vmem:[%s2046_s19 + $0xa8] sm:$0xff]  ;;  %301 = vst [vmem:[%s266_s20 + $0x48] sm:$0xff] %v300_v10 }
  0x1c   : > { %303 = vst [vmem:[%s266_s20 + $0x50] sm:$0xff] %v302_v11  ;;  %305 = vst [vmem:[%s266_s20 + $0x58] sm:$0xff] %v304_v12  ;;  %v306_v13 = vld [vmem:[%s2046_s19 + $0xc0] sm:$0xff]  ;;  %v308_v14 = vld [vmem:[%s2046_s19 + $0xc8] sm:$0xff] }
  0x1d   : > { %v310_v15 = vld [vmem:[%s2046_s19 + $0xe0] sm:$0xff]  ;;  %307 = vst [vmem:[%s266_s20 + $0x60] sm:$0xff] %v306_v13  ;;  %309 = vst [vmem:[%s266_s20 + $0x68] sm:$0xff] %v308_v14  ;;  %v312_v16 = vld [vmem:[%s2046_s19 + $0xe8] sm:$0xff] }
  0x1e   : > { %311 = vst [vmem:[%s266_s20 + $0x70] sm:$0xff] %v310_v15  ;;  %313 = vst [vmem:[%s266_s20 + $0x78] sm:$0xff] %v312_v16 }
  0x1f PF: > { %p1597_p7 = scmp.ge.s32.totalorder %s1940_s9, 1  ;;  %p326_p8 = scmp.lt.s32.totalorder %s1940_s9, 5 }
  0x21   : > { %p327_p9 = pnand %p1597_p7, %p326_p8 }
  0x22   : > { %s333_s21 = sand.u32 (!%p327_p9), 1, %s1916_s26   ;;  %s1599_s22 = sshll.u32 (!%p327_p9), %s1924_s28, 4 }
  0x23   : > { %330 = sbr.rel (%p327_p9) target bundleno = 963 (0x3c3), region = 59  ;;  %s1598_s23 = sshll.u32 (!%p327_p9), %s333_s21, 7 }
  0x24   : > { %p384_p10 = scmp.lt.s32.totalorder (!%p327_p9), %s1599_s22, 31  ;;  %s2070_s24 = scalar_lea.vmem (!%p327_p9), [#allocation6], %s1598_s23 }
  0x25   : > { %s1601_s23 = sshll.u32 (!%p327_p9), %s1928_s29, 1  ;;  %p1624_p12 = scmp.ne.s32.totalorder (!%p327_p9), %s1928_s29, 0 }
  0x26   : > { %p391_p11 = scmp.lt.s32.totalorder (!%p327_p9), %s1601_s23, 3 }
  0x28   : > { %v1942_v17 = vmov 0.0   ;;  %v444_v18 = vld [vmem:[%s2070_s24 + $0x78] sm:$0xff]  ;;  %v443_v19 = vld [vmem:[%s2070_s24 + $0x70] sm:$0xff]  ;;  %v442_v20 = vld [vmem:[%s2070_s24 + $0x68] sm:$0xff]  ;;  %s2842_s22 = smov (!%p384_p10, %s1599_s22), 31  ;;  %vm457_vm0 = vcmask 523264   ;;  %v447_v50 = vlaneseq }
  0x29   : > { %570 = vmatprep.mubr.f32.mxu0 %v1942_v17  ;;  %618 = vmatprep.mubr.f32.mxu1 %v1942_v17  ;;  %v441_v21 = vld [vmem:[%s2070_s24 + $0x60] sm:$0xff]  ;;  %v440_v22 = vld [vmem:[%s2070_s24 + $0x58] sm:$0xff]  ;;  %s2077_s25 = sshll.u32 %s2842_s22, 3  ;;  %v439_v23 = vld [vmem:[%s2070_s24 + $0x50] sm:$0xff]  ;;  %s2844_s23 = smov (!%p391_p11, %s1601_s23), 3 }
  0x2a   : > { %522 = vmatprep.subr.mxu0 %v444_v18  ;;  %1648 = vmatprep.subr.mxu1 %v444_v18  ;;  %s2084_s12 = scalar_lea.vmem %s2826_s5, %s2077_s25  ;;  %v438_v24 = vld [vmem:[%s2070_s24 + $0x48] sm:$0xff]  ;;  %s2091_s16 = scalar_lea.vmem %s2827_s6, %s2077_s25  ;;  %v437_v25 = vld [vmem:[%s2070_s24 + $0x40] sm:$0xff]  ;;  %v436_v26 = vld [vmem:[%s2070_s24 + $0x38] sm:$0xff]  ;;  %v448_v51 = vshrl.u32 %v447_v50, 7 }
  0x2b   : > { %523 = vmatpush1.msra.mxu0 %v443_v19  ;;  %1656 = vmatpush1.msra.mxu1 %v443_v19  ;;  %s2097_s19 = scalar_lea.vmem %s2828_s7, %s2077_s25  ;;  %v435_v27 = vld [vmem:[%s2070_s24 + $0x30] sm:$0xff]  ;;  %v434_v28 = vld [vmem:[%s2070_s24 + $0x28] sm:$0xff]  ;;  %v433_v29 = vld [vmem:[%s2070_s24 + $0x20] sm:$0xff]  ;;  %s2110_s22 = scalar_lea.vmem %s2821_s0, %s2077_s25 }
  0x2c   : > { %524 = vmatprep.subr.mxu0 %v442_v20  ;;  %1649 = vmatprep.subr.mxu1 %v442_v20  ;;  %v432_v30 = vld [vmem:[%s2070_s24 + $0x18] sm:$0xff]  ;;  %v431_v31 = vld [vmem:[%s2070_s24 + $0x10] sm:$0xff]  ;;  %v430_v32 = vld [vmem:[%s2070_s24 + $0x8] sm:$0xff]  ;;  %s393_s26 = scalar_lea.vmem %s2823_s2, %s2844_s23  ;;  %v449_v52 = vsub.s32 0, %v448_v51  ;;  %v453_v54 = vsub.s32 1, %v448_v51  ;;  %s2329_s29 = sshll.u32 (!%p1624_p12), %s1924_s28, 7 }
  0x2d   : > { %525 = vmatpush1.msra.mxu0 %v441_v21  ;;  %1657 = vmatpush1.msra.mxu1 %v441_v21  ;;  %v429_v33 = vld [vmem:[%s2070_s24] sm:$0xff]  ;;  %v2139_v38 = vld [vmem:[%s2110_s22 + $0x10] sm:$0xff]  ;;  %v2151_v40 = vld [vmem:[%s2110_s22 + $0x18] sm:$0xff]  ;;  %s672_s15 = scalar_lea.vmem (!%p1624_p12), [#allocation2], %s2329_s29  ;;  %s690_s17 = scalar_lea.vmem (!%p1624_p12), [#allocation3], %s2329_s29 }
  0x2e   : > { %526 = vmatprep.subr.mxu0 %v440_v22  ;;  %1650 = vmatprep.subr.mxu1 %v440_v22  ;;  %v2115_v34 = vld [vmem:[%s2110_s22] sm:$0xff]  ;;  %v2127_v36 = vld [vmem:[%s2110_s22 + $0x8] sm:$0xff]  ;;  %v2142_v39 = vld [vmem:[%s2110_s22 + $0x50] sm:$0xff]  ;;  %s2404_s18 = scalar_lea.vmem (!%p1624_p12), [#allocation4], %s2329_s29 }
  0x2f   : > { %527 = vmatpush1.msra.mxu0 %v439_v23  ;;  %1658 = vmatpush1.msra.mxu1 %v439_v23  ;;  %v2118_v35 = vld [vmem:[%s2110_s22 + $0x40] sm:$0xff]  ;;  %v2130_v37 = vld [vmem:[%s2110_s22 + $0x48] sm:$0xff]  ;;  %v2154_v41 = vld [vmem:[%s2110_s22 + $0x58] sm:$0xff] }
  0x30   : > { %528 = vmatprep.subr.mxu0 %v438_v24  ;;  %1651 = vmatprep.subr.mxu1 %v438_v24  ;;  %v2163_v42 = vld [vmem:[%s2110_s22 + $0x20] sm:$0xff]  ;;  %v2175_v44 = vld [vmem:[%s2110_s22 + $0x28] sm:$0xff]  ;;  %v2187_v46 = vld [vmem:[%s2110_s22 + $0x30] sm:$0xff] }
  0x31   : > { %529 = vmatpush1.msra.mxu0 %v437_v25  ;;  %1659 = vmatpush1.msra.mxu1 %v437_v25  ;;  %v2166_v43 = vld [vmem:[%s2110_s22 + $0x60] sm:$0xff]  ;;  %v2178_v45 = vld [vmem:[%s2110_s22 + $0x68] sm:$0xff]  ;;  %v2190_v47 = vld [vmem:[%s2110_s22 + $0x70] sm:$0xff] }
  0x32   : > { %530 = vmatprep.subr.mxu0 %v436_v26  ;;  %1652 = vmatprep.subr.mxu1 %v436_v26  ;;  %v2199_v48 = vld [vmem:[%s2110_s22 + $0x38] sm:$0xff]  ;;  %v445_v53 = vld [vmem:[%s393_s26] sm:$0x3] }
  0x33   : > { %531 = vmatpush1.msra.mxu0 %v435_v27  ;;  %1660 = vmatpush1.msra.mxu1 %v435_v27  ;;  %v2202_v49 = vld [vmem:[%s2110_s22 + $0x78] sm:$0xff]  ;;  %v450_v55 = vrot.slane %v445_v53, %v449_v52  ;;  %v2212_v56 = vrot.slane %v445_v53, %v453_v54 }
  0x34   : > { %532 = vmatprep.subr.mxu0 %v434_v28  ;;  %1653 = vmatprep.subr.mxu1 %v434_v28 }
  0x35   : > { %533 = vmatpush1.msra.mxu0 %v433_v29  ;;  %1661 = vmatpush1.msra.mxu1 %v433_v29 }
  0x36   : > { %534 = vmatprep.subr.mxu0 %v432_v30  ;;  %1654 = vmatprep.subr.mxu1 %v432_v30 }
  0x37   : > { %535 = vmatpush1.msra.mxu0 %v431_v31  ;;  %1662 = vmatpush1.msra.mxu1 %v431_v31 }
  0x38   : > { %536 = vmatprep.subr.mxu0 %v430_v32  ;;  %1655 = vmatprep.subr.mxu1 %v430_v32 }
  0x39   : > { %537 = vmatpush1.msra.mxu0 %v429_v33  ;;  %1663 = vmatpush1.msra.mxu1 %v429_v33 }
  0x3a   : > { %1608 = vmatmul.mubr.msk.f32.vlgmr.msra.gmra.mxu0 %vm457_vm0, %v2115_v34  ;;  %1616 = vmatmul.mubr.msk.f32.vlgmr.msra.gmra.mxu1 %vm457_vm0, %v2118_v35 }
  0x3b   : > { %576 = vmatprep.mubr.f32.mxu0 %v1942_v17  ;;  %624 = vmatprep.mubr.f32.mxu1 %v1942_v17 }
  0x3e   : > { %1609 = vmatmul.mubr.msk.f32.gmra.mxu0 %vm457_vm0, %v2127_v36  ;;  %1617 = vmatmul.mubr.msk.f32.gmra.mxu1 %vm457_vm0, %v2130_v37 }
  0x3f   : > { %582 = vmatprep.mubr.f32.mxu0 %v1942_v17  ;;  %630 = vmatprep.mubr.f32.mxu1 %v1942_v17 }
  0x42   : > { %1610 = vmatmul.mubr.msk.f32.gmra.mxu0 %vm457_vm0, %v2139_v38  ;;  %1618 = vmatmul.mubr.msk.f32.gmra.mxu1 %vm457_vm0, %v2142_v39 }
  0x43   : > { %588 = vmatprep.mubr.f32.mxu0 %v1942_v17  ;;  %636 = vmatprep.mubr.f32.mxu1 %v1942_v17 }
  0x46   : > { %1611 = vmatmul.mubr.msk.f32.gmra.mxu0 %vm457_vm0, %v2151_v40  ;;  %1619 = vmatmul.mubr.msk.f32.gmra.mxu1 %vm457_vm0, %v2154_v41 }
  0x47   : > { %594 = vmatprep.mubr.f32.mxu0 %v1942_v17  ;;  %642 = vmatprep.mubr.f32.mxu1 %v1942_v17 }
  0x4a   : > { %1612 = vmatmul.mubr.msk.f32.gmra.mxu0 %vm457_vm0, %v2163_v42  ;;  %1620 = vmatmul.mubr.msk.f32.gmra.mxu1 %vm457_vm0, %v2166_v43 }
  0x4b   : > { %600 = vmatprep.mubr.f32.mxu0 %v1942_v17  ;;  %648 = vmatprep.mubr.f32.mxu1 %v1942_v17 }
  0x4e   : > { %1613 = vmatmul.mubr.msk.f32.gmra.mxu0 %vm457_vm0, %v2175_v44  ;;  %1621 = vmatmul.mubr.msk.f32.gmra.mxu1 %vm457_vm0, %v2178_v45 }
  0x4f   : > { %606 = vmatprep.mubr.f32.mxu0 %v1942_v17  ;;  %654 = vmatprep.mubr.f32.mxu1 %v1942_v17 }
  0x52   : > { %1614 = vmatmul.mubr.msk.f32.gmra.mxu0 %vm457_vm0, %v2187_v46  ;;  %1622 = vmatmul.mubr.msk.f32.gmra.mxu1 %vm457_vm0, %v2190_v47 }
  0x53   : > { %612 = vmatprep.mubr.f32.mxu0 %v1942_v17  ;;  %660 = vmatprep.mubr.f32.mxu1 %v1942_v17 }
  0x56   : > { %1615 = vmatmul.mubr.msk.f32.gmra.mxu0 %vm457_vm0, %v2199_v48  ;;  %1623 = vmatmul.mubr.msk.f32.gmra.mxu1 %vm457_vm0, %v2202_v49 }
  0xfa   : > { %v572_v57 = vpop.f32.mrf.mxu0  ;;  %v620_v58 = vpop.f32.mrf.mxu1 }
  0xfb   : > { %v2214_v59 = vadd.f32 %v572_v57, %v450_v55  ;;  %v2216_v60 = vadd.f32 %v620_v58, %v450_v55 }
  0xfc   : > { %v574_v61 = vpop.f32.mrf.mxu0  ;;  %v622_v62 = vpop.f32.mrf.mxu1 }
  0xfd   : > { %v2219_v63 = vadd.f32 %v574_v61, %v2212_v56  ;;  %v2222_v0 = vadd.f32 %v622_v62, %v2212_v56 }
  0xfe   : > { %v578_v1 = vpop.f32.mrf.mxu0  ;;  %v626_v2 = vpop.f32.mrf.mxu1 }
  0xff   : > { %v2224_v3 = vadd.f32 %v578_v1, %v450_v55  ;;  %v2226_v4 = vadd.f32 %v626_v2, %v450_v55 }
 0x100   : > { %v580_v5 = vpop.f32.mrf.mxu0  ;;  %v628_v6 = vpop.f32.mrf.mxu1 }
 0x101   : > { %v2229_v7 = vadd.f32 %v580_v5, %v2212_v56  ;;  %v2232_v8 = vadd.f32 %v628_v6, %v2212_v56 }
 0x102   : > { %v584_v9 = vpop.f32.mrf.mxu0  ;;  %v632_v10 = vpop.f32.mrf.mxu1 }
 0x103   : > { %v2234_v11 = vadd.f32 %v584_v9, %v450_v55  ;;  %v2236_v12 = vadd.f32 %v632_v10, %v450_v55 }
 0x104   : > { %v586_v13 = vpop.f32.mrf.mxu0  ;;  %v634_v14 = vpop.f32.mrf.mxu1 }
 0x105   : > { %v2239_v15 = vadd.f32 %v586_v13, %v2212_v56  ;;  %v2242_v16 = vadd.f32 %v634_v14, %v2212_v56 }
 0x106   : > { %v590_v17 = vpop.f32.mrf.mxu0  ;;  %v638_v18 = vpop.f32.mrf.mxu1 }
 0x107   : > { %v2244_v19 = vadd.f32 %v590_v17, %v450_v55  ;;  %v2246_v20 = vadd.f32 %v638_v18, %v450_v55 }
 0x108   : > { %v592_v21 = vpop.f32.mrf.mxu0  ;;  %v640_v22 = vpop.f32.mrf.mxu1 }
 0x109   : > { %v2249_v23 = vadd.f32 %v592_v21, %v2212_v56  ;;  %v2252_v24 = vadd.f32 %v640_v22, %v2212_v56 }
 0x10a   : > { %v596_v25 = vpop.f32.mrf.mxu0  ;;  %v644_v26 = vpop.f32.mrf.mxu1 }
 0x10b   : > { %v2254_v27 = vadd.f32 %v596_v25, %v450_v55  ;;  %v2256_v28 = vadd.f32 %v644_v26, %v450_v55 }
 0x10c   : > { %v598_v29 = vpop.f32.mrf.mxu0  ;;  %v646_v30 = vpop.f32.mrf.mxu1 }
 0x10d   : > { %v2259_v31 = vadd.f32 %v598_v29, %v2212_v56  ;;  %v2262_v32 = vadd.f32 %v646_v30, %v2212_v56 }
 0x10e   : > { %v602_v33 = vpop.f32.mrf.mxu0  ;;  %v650_v50 = vpop.f32.mrf.mxu1 }
 0x10f   : > { %v2264_v51 = vadd.f32 %v602_v33, %v450_v55  ;;  %v2266_v52 = vadd.f32 %v650_v50, %v450_v55 }
 0x110   : > { %v604_v53 = vpop.f32.mrf.mxu0  ;;  %v652_v54 = vpop.f32.mrf.mxu1 }
 0x111   : > { %v2269_v57 = vadd.f32 %v604_v53, %v2212_v56  ;;  %v2272_v58 = vadd.f32 %v652_v54, %v2212_v56 }
 0x112   : > { %v608_v61 = vpop.f32.mrf.mxu0  ;;  %v656_v62 = vpop.f32.mrf.mxu1 }
 0x113   : > { %v2274_v1 = vadd.f32 %v608_v61, %v450_v55  ;;  %v2276_v2 = vadd.f32 %v656_v62, %v450_v55 }
 0x114   : > { %v610_v5 = vpop.f32.mrf.mxu0  ;;  %v658_v6 = vpop.f32.mrf.mxu1 }
 0x115   : > { %v2279_v9 = vadd.f32 %v610_v5, %v2212_v56  ;;  %v2282_v10 = vadd.f32 %v658_v6, %v2212_v56  ;;  %670 = sbr.rel (%p1624_p12) target bundleno = 490 (0x1ea), region = 67 }
 0x116   : > { %v614_v13 = vpop.f32.mrf.mxu0  ;;  %v662_v14 = vpop.f32.mrf.mxu1 }
 0x117   : > { %v2284_v17 = vadd.f32 %v614_v13, %v450_v55  ;;  %v2286_v18 = vadd.f32 %v662_v14, %v450_v55 }
 0x118   : > { %v616_v21 = vpop.f32.mrf.mxu0  ;;  %v664_v22 = vpop.f32.mrf.mxu1 }
 0x119   : > { %v2289_v25 = vadd.f32 %v616_v21, %v2212_v56  ;;  %v2292_v26 = vadd.f32 %v664_v22, %v2212_v56 }
 0x11a   : > { %v2298_v29 = vld [vmem:[%s2824_s3] ss:$0 sm:$0xff]  ;;  %vm673_vm1 = vcmask 7168  }
 0x11b   : > { %v716_v55 = vmul.f32 %v2298_v29, %v2139_v38  ;;  %v714_v30 = vmul.f32 %v2298_v29, %v2115_v34  ;;  %v717_v33 = vmul.f32 %v2298_v29, %v2151_v40  ;;  %v715_v56 = vmul.f32 %v2298_v29, %v2127_v36 }
 0x11c   : > { %v719_v34 = vmul.f32 %v2298_v29, %v2175_v44  ;;  %v718_v40 = vmul.f32 %v2298_v29, %v2163_v42  ;;  %v721_v36 = vmul.f32 %v2298_v29, %v2199_v48  ;;  %v720_v61 = vmul.f32 %v2298_v29, %v2187_v46 }
 0x11d   : > { %v736_v50 = vsel %vm457_vm0, %v716_v55, 0.0  ;;  %v730_v53 = vsel %vm457_vm0, %v714_v30, 0.0  ;;  %v739_v54 = vsel %vm457_vm0, %v717_v33, 0.0  ;;  %v733_v38 = vsel %vm457_vm0, %v715_v56, 0.0 }
 0x11e   : > { %737 = vadd.xlane.f32.xlu1 %v736_v50  ;;  %731 = vadd.xlane.f32.xlu0 %v730_v53  ;;  %v745_v62 = vsel %vm457_vm0, %v719_v34, 0.0  ;;  %v742_v5 = vsel %vm457_vm0, %v718_v40, 0.0  ;;  %v751_v6 = vsel %vm457_vm0, %v721_v36, 0.0  ;;  %v748_v44 = vsel %vm457_vm0, %v720_v61, 0.0 }
 0x11f   : > { %v723_v42 = vmul.f32 %v2298_v29, %v2130_v37  ;;  %v722_v13 = vmul.f32 %v2298_v29, %v2118_v35  ;;  %v1943_v46 = vmov -inf   ;;  %v1944_v35 = vmov 0.0  }
 0x120   : > { %674 = vst.msk [vmem:[%s672_s15] sm:$0xff] %vm673_vm1, %v1943_v46  ;;  %675 = vst.msk [vmem:[%s672_s15 + $0x8] sm:$0xff] %vm673_vm1, %v1943_v46  ;;  %v725_v14 = vmul.f32 %v2298_v29, %v2154_v41  ;;  %v724_v21 = vmul.f32 %v2298_v29, %v2142_v39  ;;  %v727_v30 = vmul.f32 %v2298_v29, %v2178_v45 }
 0x121   : > { %676 = vst.msk [vmem:[%s672_s15 + $0x10] sm:$0xff] %vm673_vm1, %v1943_v46  ;;  %677 = vst.msk [vmem:[%s672_s15 + $0x18] sm:$0xff] %vm673_vm1, %v1943_v46  ;;  %v757_v37 = vsel %vm457_vm0, %v723_v42, 0.0  ;;  %v754_v48 = vsel %vm457_vm0, %v722_v13, 0.0  ;;  %v726_v33 = vmul.f32 %v2298_v29, %v2166_v43  ;;  %v729_v39 = vmul.f32 %v2298_v29, %v2202_v49  ;;  %v2385_v43 = vld [vmem:[#allocation5] ss:$0 sm:$0xff] }
 0x122   : > { %740 = vadd.xlane.f32.xlu1 %v739_v54  ;;  %734 = vadd.xlane.f32.xlu0 %v733_v38  ;;  %678 = vst.msk [vmem:[%s672_s15 + $0x20] sm:$0xff] %vm673_vm1, %v1943_v46  ;;  %679 = vst.msk [vmem:[%s672_s15 + $0x28] sm:$0xff] %vm673_vm1, %v1943_v46  ;;  %v763_v22 = vsel %vm457_vm0, %v725_v14, 0.0  ;;  %v760_v55 = vsel %vm457_vm0, %v724_v21, 0.0  ;;  %v769_v56 = vsel %vm457_vm0, %v727_v30, 0.0  ;;  %v728_v50 = vmul.f32 %v2298_v29, %v2190_v47 }
 0x123   : > { %680 = vst.msk [vmem:[%s672_s15 + $0x30] sm:$0xff] %vm673_vm1, %v1943_v46  ;;  %681 = vst.msk [vmem:[%s672_s15 + $0x38] sm:$0xff] %vm673_vm1, %v1943_v46  ;;  %v766_v41 = vsel %vm457_vm0, %v726_v33, 0.0  ;;  %v775_v53 = vsel %vm457_vm0, %v729_v39, 0.0 }
 0x124   : > { %682 = vst.msk [vmem:[%s672_s15 + $0x40] sm:$0xff] %vm673_vm1, %v1943_v46  ;;  %683 = vst.msk [vmem:[%s672_s15 + $0x48] sm:$0xff] %vm673_vm1, %v1943_v46  ;;  %v772_v45 = vsel %vm457_vm0, %v728_v50, 0.0 }
 0x125   : > { %684 = vst.msk [vmem:[%s672_s15 + $0x50] sm:$0xff] %vm673_vm1, %v1943_v46  ;;  %685 = vst.msk [vmem:[%s672_s15 + $0x58] sm:$0xff] %vm673_vm1, %v1943_v46 }
 0x126   : > { %746 = vadd.xlane.f32.xlu1 %v745_v62  ;;  %743 = vadd.xlane.f32.xlu0 %v742_v5  ;;  %686 = vst.msk [vmem:[%s672_s15 + $0x60] sm:$0xff] %vm673_vm1, %v1943_v46  ;;  %687 = vst.msk [vmem:[%s672_s15 + $0x68] sm:$0xff] %vm673_vm1, %v1943_v46 }
 0x127   : > { %688 = vst.msk [vmem:[%s672_s15 + $0x70] sm:$0xff] %vm673_vm1, %v1943_v46  ;;  %689 = vst.msk [vmem:[%s672_s15 + $0x78] sm:$0xff] %vm673_vm1, %v1943_v46 }
 0x128   : > { %691 = vst.msk [vmem:[%s690_s17] sm:$0xff] %vm673_vm1, %v1944_v35  ;;  %692 = vst.msk [vmem:[%s690_s17 + $0x8] sm:$0xff] %vm673_vm1, %v1944_v35 }
 0x129   : > { %693 = vst.msk [vmem:[%s690_s17 + $0x10] sm:$0xff] %vm673_vm1, %v1944_v35  ;;  %694 = vst.msk [vmem:[%s690_s17 + $0x18] sm:$0xff] %vm673_vm1, %v1944_v35 }
 0x12a   : > { %695 = vst.msk [vmem:[%s690_s17 + $0x20] sm:$0xff] %vm673_vm1, %v1944_v35  ;;  %696 = vst.msk [vmem:[%s690_s17 + $0x28] sm:$0xff] %vm673_vm1, %v1944_v35  ;;  %752 = vadd.xlane.f32.xlu1 %v751_v6  ;;  %749 = vadd.xlane.f32.xlu0 %v748_v44 }
 0x12b   : > { %697 = vst.msk [vmem:[%s690_s17 + $0x30] sm:$0xff] %vm673_vm1, %v1944_v35  ;;  %698 = vst.msk [vmem:[%s690_s17 + $0x38] sm:$0xff] %vm673_vm1, %v1944_v35 }
 0x12c   : > { %699 = vst.msk [vmem:[%s690_s17 + $0x40] sm:$0xff] %vm673_vm1, %v1944_v35  ;;  %700 = vst.msk [vmem:[%s690_s17 + $0x48] sm:$0xff] %vm673_vm1, %v1944_v35 }
 0x12d   : > { %701 = vst.msk [vmem:[%s690_s17 + $0x50] sm:$0xff] %vm673_vm1, %v1944_v35  ;;  %702 = vst.msk [vmem:[%s690_s17 + $0x58] sm:$0xff] %vm673_vm1, %v1944_v35 }
 0x12e   : > { %703 = vst.msk [vmem:[%s690_s17 + $0x60] sm:$0xff] %vm673_vm1, %v1944_v35  ;;  %704 = vst.msk [vmem:[%s690_s17 + $0x68] sm:$0xff] %vm673_vm1, %v1944_v35  ;;  %758 = vadd.xlane.f32.xlu1 %v757_v37  ;;  %755 = vadd.xlane.f32.xlu0 %v754_v48 }
 0x12f   : > { %705 = vst.msk [vmem:[%s690_s17 + $0x70] sm:$0xff] %vm673_vm1, %v1944_v35  ;;  %706 = vst.msk [vmem:[%s690_s17 + $0x78] sm:$0xff] %vm673_vm1, %v1944_v35 }
 0x132   : > { %764 = vadd.xlane.f32.xlu1 %v763_v22  ;;  %761 = vadd.xlane.f32.xlu0 %v760_v55 }
 0x136   : > { %770 = vadd.xlane.f32.xlu1 %v769_v56  ;;  %767 = vadd.xlane.f32.xlu0 %v766_v41 }
 0x13a   : > { %776 = vadd.xlane.f32.xlu1 %v775_v53  ;;  %773 = vadd.xlane.f32.xlu0 %v772_v45 }
 0x1a7   : > { %v738_v54 = vpop.xlane.xlu1 %737  ;;  %v732_v38 = vpop.xlane.xlu0 %731 }
 0x1a8   : > { %v787_v34 = vadd.f32 %v2385_v43, %v738_v54  ;;  %v785_v40 = vadd.f32 %v2385_v43, %v732_v38 }
 0x1aa   : > { %v1630_v49 = vmul.f32 -1.442695, %v787_v34  ;;  %v1628_v36 = vmul.f32 -1.442695, %v785_v40 }
 0x1ab   : > { %v741_v61 = vpop.xlane.xlu1 %740  ;;  %v735_v47 = vpop.xlane.xlu0 %734 }
 0x1ac   : > { %1724 = vpow2.f32 %v1630_v49  ;;  %v788_v29 = vadd.f32 %v2385_v43, %v741_v61  ;;  %v786_v62 = vadd.f32 %v2385_v43, %v735_v47 }
 0x1ad   : > { %1726 = vpow2.f32 %v1628_v36 }
 0x1ae   : > { %v1631_v5 = vmul.f32 -1.442695, %v788_v29  ;;  %v1629_v6 = vmul.f32 -1.442695, %v786_v62 }
 0x1af   : > { %v747_v44 = vpop.xlane.xlu1 %746  ;;  %v744_v42 = vpop.xlane.xlu0 %743 }
 0x1b0   : > { %1728 = vpow2.f32 %v1631_v5  ;;  %v790_v13 = vadd.f32 %v2385_v43, %v747_v44  ;;  %v789_v46 = vadd.f32 %v2385_v43, %v744_v42 }
 0x1b1   : > { %1730 = vpow2.f32 %v1629_v6 }
 0x1b2   : > { %v1633_v35 = vmul.f32 -1.442695, %v790_v13  ;;  %v1632_v37 = vmul.f32 -1.442695, %v789_v46 }
 0x1b3   : > { %v753_v48 = vpop.xlane.xlu1 %752  ;;  %v750_v14 = vpop.xlane.xlu0 %749 }
 0x1b4   : > { %1732 = vpow2.f32 %v1633_v35  ;;  %v792_v21 = vadd.f32 %v2385_v43, %v753_v48  ;;  %v791_v22 = vadd.f32 %v2385_v43, %v750_v14 }
 0x1b5   : > { %1734 = vpow2.f32 %v1632_v37 }
 0x1b6   : > { %v1635_v55 = vmul.f32 -1.442695, %v792_v21  ;;  %v1634_v30 = vmul.f32 -1.442695, %v791_v22 }
 0x1b7   : > { %v759_v33 = vpop.xlane.xlu1 %758  ;;  %v756_v56 = vpop.xlane.xlu0 %755 }
 0x1b8   : > { %1736 = vpow2.f32 %v1635_v55  ;;  %v794_v41 = vadd.f32 %v2385_v43, %v759_v33  ;;  %v793_v39 = vadd.f32 %v2385_v43, %v756_v56 }
 0x1b9   : > { %v1725_v50 = vpop.eup %1724  ;;  %1738 = vpow2.f32 %v1634_v30 }
 0x1ba   : > { %v1727_v53 = vpop.eup %1726  ;;  %v851_v45 = vadd.f32 1.0, %v1725_v50  ;;  %v1637_v54 = vmul.f32 -1.442695, %v794_v41  ;;  %v1636_v34 = vmul.f32 -1.442695, %v793_v39 }
 0x1bb   : > { %v849_v38 = vadd.f32 1.0, %v1727_v53  ;;  %v765_v40 = vpop.xlane.xlu1 %764  ;;  %v762_v49 = vpop.xlane.xlu0 %761 }
 0x1bc   : > { %1740 = vrcp.f32 %v851_v45  ;;  %v796_v36 = vadd.f32 %v2385_v43, %v765_v40  ;;  %v795_v61 = vadd.f32 %v2385_v43, %v762_v49 }
 0x1bd   : > { %v1729_v47 = vpop.eup %1728  ;;  %1742 = vrcp.f32 %v849_v38 }
 0x1be   : > { %v1731_v29 = vpop.eup %1730  ;;  %v852_v62 = vadd.f32 1.0, %v1729_v47  ;;  %1744 = vpow2.f32 %v1637_v54  ;;  %v1639_v5 = vmul.f32 -1.442695, %v796_v36  ;;  %v1638_v44 = vmul.f32 -1.442695, %v795_v61 }
 0x1bf   : > { %v850_v6 = vadd.f32 1.0, %v1731_v29  ;;  %1746 = vpow2.f32 %v1636_v34  ;;  %v771_v42 = vpop.xlane.xlu1 %770  ;;  %v768_v13 = vpop.xlane.xlu0 %767 }
 0x1c0   : > { %1748 = vrcp.f32 %v852_v62  ;;  %v798_v46 = vadd.f32 %v2385_v43, %v771_v42  ;;  %v797_v35 = vadd.f32 %v2385_v43, %v768_v13 }
 0x1c1   : > { %v1733_v37 = vpop.eup %1732  ;;  %1750 = vrcp.f32 %v850_v6 }
 0x1c2   : > { %v1735_v48 = vpop.eup %1734  ;;  %v854_v14 = vadd.f32 1.0, %v1733_v37  ;;  %1752 = vpow2.f32 %v1639_v5  ;;  %v1641_v21 = vmul.f32 -1.442695, %v798_v46  ;;  %v1640_v55 = vmul.f32 -1.442695, %v797_v35 }
 0x1c3   : > { %v853_v22 = vadd.f32 1.0, %v1735_v48  ;;  %1754 = vpow2.f32 %v1638_v44  ;;  %v777_v30 = vpop.xlane.xlu1 %776  ;;  %v774_v33 = vpop.xlane.xlu0 %773 }
 0x1c4   : > { %1756 = vrcp.f32 %v854_v14  ;;  %v800_v56 = vadd.f32 %v2385_v43, %v777_v30  ;;  %v799_v41 = vadd.f32 %v2385_v43, %v774_v33 }
 0x1c5   : > { %v1737_v39 = vpop.eup %1736  ;;  %1758 = vrcp.f32 %v853_v22 }
 0x1c6   : > { %v1739_v50 = vpop.eup %1738  ;;  %v856_v53 = vadd.f32 1.0, %v1737_v39  ;;  %1760 = vpow2.f32 %v1641_v21  ;;  %v1643_v45 = vmul.f32 -1.442695, %v800_v56  ;;  %v1642_v38 = vmul.f32 -1.442695, %v799_v41 }
 0x1c7   : > { %v855_v54 = vadd.f32 1.0, %v1739_v50  ;;  %1762 = vpow2.f32 %v1640_v55 }
 0x1c8   : > { %1764 = vrcp.f32 %v856_v53 }
 0x1c9   : > { %v1741_v34 = vpop.eup %1740  ;;  %1766 = vrcp.f32 %v855_v54 }
 0x1ca   : > { %v1743_v40 = vpop.eup %1742  ;;  %900 = vst.msk [vmem:[%s2404_s18 + $0x10] sm:$0xff] %vm673_vm1, %v1741_v34  ;;  %1768 = vpow2.f32 %v1643_v45 }
 0x1cb   : > { %v1745_v43 = vpop.eup %1744  ;;  %898 = vst.msk [vmem:[%s2404_s18] sm:$0xff] %vm673_vm1, %v1743_v40  ;;  %1770 = vpow2.f32 %v1642_v38 }
 0x1cc   : > { %v1747_v49 = vpop.eup %1746  ;;  %v858_v36 = vadd.f32 1.0, %v1745_v43 }
 0x1cd   : > { %v1749_v61 = vpop.eup %1748  ;;  %v857_v47 = vadd.f32 1.0, %v1747_v49 }
 0x1ce   : > { %v1751_v29 = vpop.eup %1750  ;;  %901 = vst.msk [vmem:[%s2404_s18 + $0x18] sm:$0xff] %vm673_vm1, %v1749_v61  ;;  %1772 = vrcp.f32 %v858_v36 }
 0x1cf   : > { %v1753_v62 = vpop.eup %1752  ;;  %899 = vst.msk [vmem:[%s2404_s18 + $0x8] sm:$0xff] %vm673_vm1, %v1751_v29  ;;  %1774 = vrcp.f32 %v857_v47 }
 0x1d0   : > { %v1755_v5 = vpop.eup %1754  ;;  %v860_v6 = vadd.f32 1.0, %v1753_v62 }
 0x1d1   : > { %v1757_v44 = vpop.eup %1756  ;;  %v859_v42 = vadd.f32 1.0, %v1755_v5 }
 0x1d2   : > { %v1759_v13 = vpop.eup %1758  ;;  %903 = vst.msk [vmem:[%s2404_s18 + $0x28] sm:$0xff] %vm673_vm1, %v1757_v44  ;;  %1776 = vrcp.f32 %v860_v6 }
 0x1d3   : > { %v1761_v46 = vpop.eup %1760  ;;  %902 = vst.msk [vmem:[%s2404_s18 + $0x20] sm:$0xff] %vm673_vm1, %v1759_v13  ;;  %1778 = vrcp.f32 %v859_v42 }
 0x1d4   : > { %v1763_v35 = vpop.eup %1762  ;;  %v862_v37 = vadd.f32 1.0, %v1761_v46 }
 0x1d5   : > { %v1765_v48 = vpop.eup %1764  ;;  %v861_v14 = vadd.f32 1.0, %v1763_v35 }
 0x1d6   : > { %v1767_v21 = vpop.eup %1766  ;;  %905 = vst.msk [vmem:[%s2404_s18 + $0x38] sm:$0xff] %vm673_vm1, %v1765_v48  ;;  %1780 = vrcp.f32 %v862_v37 }
 0x1d7   : > { %v1769_v22 = vpop.eup %1768  ;;  %904 = vst.msk [vmem:[%s2404_s18 + $0x30] sm:$0xff] %vm673_vm1, %v1767_v21  ;;  %1782 = vrcp.f32 %v861_v14 }
 0x1d8   : > { %v1771_v55 = vpop.eup %1770  ;;  %v864_v30 = vadd.f32 1.0, %v1769_v22 }
 0x1d9   : > { %v863_v33 = vadd.f32 1.0, %v1771_v55 }
 0x1da   : > { %1784 = vrcp.f32 %v864_v30 }
 0x1db   : > { %v1773_v56 = vpop.eup %1772  ;;  %1786 = vrcp.f32 %v863_v33 }
 0x1dc   : > { %v1775_v41 = vpop.eup %1774  ;;  %907 = vst.msk [vmem:[%s2404_s18 + $0x48] sm:$0xff] %vm673_vm1, %v1773_v56 }
 0x1dd   : > { %906 = vst.msk [vmem:[%s2404_s18 + $0x40] sm:$0xff] %vm673_vm1, %v1775_v41 }
 0x1df   : > { %v1777_v39 = vpop.eup %1776 }
 0x1e0   : > { %v1779_v50 = vpop.eup %1778  ;;  %909 = vst.msk [vmem:[%s2404_s18 + $0x58] sm:$0xff] %vm673_vm1, %v1777_v39 }
 0x1e1   : > { %908 = vst.msk [vmem:[%s2404_s18 + $0x50] sm:$0xff] %vm673_vm1, %v1779_v50 }
 0x1e3   : > { %v1781_v53 = vpop.eup %1780 }
 0x1e4   : > { %v1783_v45 = vpop.eup %1782  ;;  %911 = vst.msk [vmem:[%s2404_s18 + $0x68] sm:$0xff] %vm673_vm1, %v1781_v53 }
 0x1e5   : > { %910 = vst.msk [vmem:[%s2404_s18 + $0x60] sm:$0xff] %vm673_vm1, %v1783_v45 }
 0x1e7   : > { %v1785_v54 = vpop.eup %1784 }
 0x1e8   : > { %v1787_v38 = vpop.eup %1786  ;;  %913 = vst.msk [vmem:[%s2404_s18 + $0x78] sm:$0xff] %vm673_vm1, %v1785_v54 }
 0x1e9   : > { %912 = vst.msk [vmem:[%s2404_s18 + $0x70] sm:$0xff] %vm673_vm1, %v1787_v38 }
 0x1ea PF: > { %v938_v34 = vmax.f32 %v2234_v11, %v2239_v15  ;;  %v932_v40 = vmax.f32 %v2214_v59, %v2219_v63  ;;  %v941_v43 = vmax.f32 %v2244_v19, %v2249_v23  ;;  %v935_v49 = vmax.f32 %v2224_v3, %v2229_v7  ;;  %s2459_s20 = sshll.u32 %s1924_s28, 7 }
 0x1eb   : > { %v947_v36 = vmax.f32 %v2264_v51, %v2269_v57  ;;  %v944_v61 = vmax.f32 %v2254_v27, %v2259_v31  ;;  %v953_v47 = vmax.f32 %v2284_v17, %v2289_v25  ;;  %v950_v29 = vmax.f32 %v2274_v1, %v2279_v9  ;;  %s2466_s21 = scalar_lea.vmem [#allocation4], %s2459_s20  ;;  %s2525_s28 = scalar_lea.vmem [#allocation2], %s2459_s20 }
 0x1ec   : > { %939 = vmax.xlane.f32.xlu1 %v938_v34  ;;  %933 = vmax.xlane.f32.xlu0 %v932_v40  ;;  %v959_v62 = vmax.f32 %v2226_v4, %v2232_v8  ;;  %v956_v5 = vmax.f32 %v2216_v60, %v2222_v0  ;;  %v1945_v6 = vmov 0   ;;  %v965_v44 = vmax.f32 %v2246_v20, %v2252_v24  ;;  %v918_v40 = vld [vmem:[%s2525_s28 + $0x10] sm:$0xff] }
 0x1ed   : > { %1788 = vset.pattern.permute.xlu0 %v1945_v6  ;;  %1789 = vset.pattern.permute.xlu1 %v1945_v6  ;;  %v962_v42 = vmax.f32 %v2236_v12, %v2242_v16  ;;  %vm1317_vm2 = vcmask 7168   ;;  %v971_v30 = vmax.f32 %v2266_v52, %v2272_v58  ;;  %v968_v33 = vmax.f32 %v2256_v28, %v2262_v32 }
 0x1ee   : > { %v977_v38 = vmax.f32 %v2286_v18, %v2292_v26  ;;  %v974_v34 = vmax.f32 %v2276_v2, %v2282_v10 }
 0x1f0   : > { %942 = vmax.xlane.f32.xlu1 %v941_v43  ;;  %936 = vmax.xlane.f32.xlu0 %v935_v49  ;;  %v1383_v13 = vld [vmem:[%s2466_s21] sm:$0xff]  ;;  %v1384_v46 = vld [vmem:[%s2466_s21 + $0x8] sm:$0xff]  ;;  %v1385_v35 = vld [vmem:[%s2466_s21 + $0x10] sm:$0xff] }
 0x1f1   : > { %v1386_v37 = vld [vmem:[%s2466_s21 + $0x18] sm:$0xff]  ;;  %v1387_v48 = vld [vmem:[%s2466_s21 + $0x20] sm:$0xff]  ;;  %v1388_v14 = vld [vmem:[%s2466_s21 + $0x28] sm:$0xff]  ;;  %1399 = vst.msk [vmem:[%s2097_s19] sm:$0xff] %vm1317_vm2, %v1383_v13 }
 0x1f2   : > { %1400 = vst.msk [vmem:[%s2097_s19 + $0x8] sm:$0xff] %vm1317_vm2, %v1384_v46  ;;  %1401 = vst.msk [vmem:[%s2097_s19 + $0x10] sm:$0xff] %vm1317_vm2, %v1385_v35  ;;  %v1389_v21 = vld [vmem:[%s2466_s21 + $0x30] sm:$0xff]  ;;  %v1390_v22 = vld [vmem:[%s2466_s21 + $0x38] sm:$0xff] }
 0x1f3   : > { %v1391_v55 = vld [vmem:[%s2466_s21 + $0x40] sm:$0xff]  ;;  %1402 = vst.msk [vmem:[%s2097_s19 + $0x18] sm:$0xff] %vm1317_vm2, %v1386_v37  ;;  %1403 = vst.msk [vmem:[%s2097_s19 + $0x20] sm:$0xff] %vm1317_vm2, %v1387_v48  ;;  %v1392_v56 = vld [vmem:[%s2466_s21 + $0x48] sm:$0xff] }
 0x1f4   : > { %948 = vmax.xlane.f32.xlu1 %v947_v36  ;;  %945 = vmax.xlane.f32.xlu0 %v944_v61  ;;  %1404 = vst.msk [vmem:[%s2097_s19 + $0x28] sm:$0xff] %vm1317_vm2, %v1388_v14  ;;  %v1393_v41 = vld [vmem:[%s2466_s21 + $0x50] sm:$0xff]  ;;  %v1394_v39 = vld [vmem:[%s2466_s21 + $0x58] sm:$0xff]  ;;  %1405 = vst.msk [vmem:[%s2097_s19 + $0x30] sm:$0xff] %vm1317_vm2, %v1389_v21 }
 0x1f5   : > { %1406 = vst.msk [vmem:[%s2097_s19 + $0x38] sm:$0xff] %vm1317_vm2, %v1390_v22  ;;  %1407 = vst.msk [vmem:[%s2097_s19 + $0x40] sm:$0xff] %vm1317_vm2, %v1391_v55  ;;  %v1395_v50 = vld [vmem:[%s2466_s21 + $0x60] sm:$0xff]  ;;  %v1396_v53 = vld [vmem:[%s2466_s21 + $0x68] sm:$0xff] }
 0x1f6   : > { %v1397_v45 = vld [vmem:[%s2466_s21 + $0x70] sm:$0xff]  ;;  %1408 = vst.msk [vmem:[%s2097_s19 + $0x48] sm:$0xff] %vm1317_vm2, %v1392_v56  ;;  %1409 = vst.msk [vmem:[%s2097_s19 + $0x50] sm:$0xff] %vm1317_vm2, %v1393_v41  ;;  %v1398_v54 = vld [vmem:[%s2466_s21 + $0x78] sm:$0xff] }
 0x1f7   : > { %1410 = vst.msk [vmem:[%s2097_s19 + $0x58] sm:$0xff] %vm1317_vm2, %v1394_v39  ;;  %1411 = vst.msk [vmem:[%s2097_s19 + $0x60] sm:$0xff] %vm1317_vm2, %v1395_v50  ;;  %v916_v43 = vld [vmem:[%s2525_s28] sm:$0xff]  ;;  %v921_v48 = vld [vmem:[%s2525_s28 + $0x28] sm:$0xff] }
 0x1f8   : > { %954 = vmax.xlane.f32.xlu1 %v953_v47  ;;  %951 = vmax.xlane.f32.xlu0 %v950_v29  ;;  %1412 = vst.msk [vmem:[%s2097_s19 + $0x68] sm:$0xff] %vm1317_vm2, %v1396_v53  ;;  %1413 = vst.msk [vmem:[%s2097_s19 + $0x70] sm:$0xff] %vm1317_vm2, %v1397_v45  ;;  %v919_v29 = vld [vmem:[%s2525_s28 + $0x18] sm:$0xff]  ;;  %v920_v14 = vld [vmem:[%s2525_s28 + $0x20] sm:$0xff] }
 0x1f9   : > { %1414 = vst.msk [vmem:[%s2097_s19 + $0x78] sm:$0xff] %vm1317_vm2, %v1398_v54  ;;  %v923_v50 = vld [vmem:[%s2525_s28 + $0x38] sm:$0xff]  ;;  %v922_v53 = vld [vmem:[%s2525_s28 + $0x30] sm:$0xff]  ;;  %s2600_s19 = scalar_lea.vmem [#allocation3], %s2459_s20 }
 0x1fc   : > { %960 = vmax.xlane.f32.xlu1 %v959_v62  ;;  %957 = vmax.xlane.f32.xlu0 %v956_v5  ;;  %v917_v62 = vld [vmem:[%s2525_s28 + $0x8] sm:$0xff] }
 0x200   : > { %966 = vmax.xlane.f32.xlu1 %v965_v44  ;;  %963 = vmax.xlane.f32.xlu0 %v962_v42 }
 0x204   : > { %972 = vmax.xlane.f32.xlu1 %v971_v30  ;;  %969 = vmax.xlane.f32.xlu0 %v968_v33 }
 0x208   : > { %978 = vmax.xlane.f32.xlu1 %v977_v38  ;;  %975 = vmax.xlane.f32.xlu0 %v974_v34 }
 0x275   : > { %v940_v49 = vpop.xlane.xlu1 %939  ;;  %v934_v36 = vpop.xlane.xlu0 %933 }
 0x276   : > { %v982_v61 = vmax.f32 %v918_v40, %v940_v49  ;;  %v980_v47 = vmax.f32 %v916_v43, %v934_v36 }
 0x278   : > { %v1015_v5 = vsub.f32 %v918_v40, %v982_v61  ;;  %1320 = vst.msk [vmem:[%s2525_s28 + $0x10] sm:$0xff] %vm1317_vm2, %v982_v61  ;;  %1352 = vst.msk [vmem:[%s2084_s12 + $0x10] sm:$0xff] %vm1317_vm2, %v982_v61  ;;  %v1013_v6 = vsub.f32 %v916_v43, %v980_v47  ;;  %1079 = vperm.xlu0 %1788, %v980_v47  }
 0x279   : > { %1318 = vst.msk [vmem:[%s2525_s28] sm:$0xff] %vm1317_vm2, %v980_v47  ;;  %1350 = vst.msk [vmem:[%s2084_s12] sm:$0xff] %vm1317_vm2, %v980_v47  ;;  %v943_v44 = vpop.xlane.xlu1 %942  ;;  %v937_v42 = vpop.xlane.xlu0 %936  ;;  %v925_v47 = vld [vmem:[%s2525_s28 + $0x48] sm:$0xff] }
 0x27a   : > { %v1033_v13 = vmul.f32 1.442695, %v1015_v5  ;;  %v1029_v46 = vmul.f32 1.442695, %v1013_v6  ;;  %v983_v35 = vmax.f32 %v919_v29, %v943_v44  ;;  %v981_v37 = vmax.f32 %v917_v62, %v937_v42 }
 0x27c   : > { %1790 = vpow2.f32 %v1033_v13  ;;  %v1016_v21 = vsub.f32 %v919_v29, %v983_v35  ;;  %1321 = vst.msk [vmem:[%s2525_s28 + $0x18] sm:$0xff] %vm1317_vm2, %v983_v35  ;;  %1353 = vst.msk [vmem:[%s2084_s12 + $0x18] sm:$0xff] %vm1317_vm2, %v983_v35  ;;  %v1014_v22 = vsub.f32 %v917_v62, %v981_v37  ;;  %1084 = vperm.xlu1 %1789, %v981_v37   ;;  %v924_v29 = vld [vmem:[%s2525_s28 + $0x40] sm:$0xff] }
 0x27d   : > { %1319 = vst.msk [vmem:[%s2525_s28 + $0x8] sm:$0xff] %vm1317_vm2, %v981_v37  ;;  %1351 = vst.msk [vmem:[%s2084_s12 + $0x8] sm:$0xff] %vm1317_vm2, %v981_v37  ;;  %1792 = vpow2.f32 %v1029_v46  ;;  %v949_v55 = vpop.xlane.xlu1 %948  ;;  %v946_v30 = vpop.xlane.xlu0 %945  ;;  %v926_v37 = vld [vmem:[%s2525_s28 + $0x50] sm:$0xff] }
 0x27e   : > { %v1035_v33 = vmul.f32 1.442695, %v1016_v21  ;;  %v1031_v56 = vmul.f32 1.442695, %v1014_v22  ;;  %v2549_v41 = vmax.f32 %v921_v48, %v949_v55  ;;  %v984_v39 = vmax.f32 %v920_v14, %v946_v30  ;;  %v997_v21 = vld [vmem:[%s2600_s19] sm:$0xff]  ;;  %v999_v22 = vld [vmem:[%s2600_s19 + $0x10] sm:$0xff] }
 0x280   : > { %1794 = vpow2.f32 %v1035_v33  ;;  %v1018_v45 = vsub.f32 %v921_v48, %v2549_v41  ;;  %1323 = vst.msk [vmem:[%s2525_s28 + $0x28] sm:$0xff] %vm1317_vm2, %v2549_v41  ;;  %1355 = vst.msk [vmem:[%s2084_s12 + $0x28] sm:$0xff] %vm1317_vm2, %v2549_v41  ;;  %1089 = vperm.xlu1 %1789, %v982_v61   ;;  %v1017_v54 = vsub.f32 %v920_v14, %v984_v39 }
 0x281   : > { %1322 = vst.msk [vmem:[%s2525_s28 + $0x20] sm:$0xff] %vm1317_vm2, %v984_v39  ;;  %1354 = vst.msk [vmem:[%s2084_s12 + $0x20] sm:$0xff] %vm1317_vm2, %v984_v39  ;;  %1796 = vpow2.f32 %v1031_v56  ;;  %v955_v38 = vpop.xlane.xlu1 %954  ;;  %v952_v34 = vpop.xlane.xlu0 %951 }
 0x282   : > { %v1039_v40 = vmul.f32 1.442695, %v1018_v45  ;;  %v2564_v43 = vmax.f32 %v923_v50, %v955_v38  ;;  %v1037_v49 = vmul.f32 1.442695, %v1017_v54  ;;  %v2566_v36 = vmax.f32 %v922_v53, %v952_v34  ;;  %v929_v54 = vld [vmem:[%s2525_s28 + $0x68] sm:$0xff]  ;;  %v928_v38 = vld [vmem:[%s2525_s28 + $0x60] sm:$0xff] }
 0x284   : > { %1798 = vpow2.f32 %v1039_v40  ;;  %v1020_v61 = vsub.f32 %v923_v50, %v2564_v43  ;;  %1325 = vst.msk [vmem:[%s2525_s28 + $0x38] sm:$0xff] %vm1317_vm2, %v2564_v43  ;;  %1357 = vst.msk [vmem:[%s2084_s12 + $0x38] sm:$0xff] %vm1317_vm2, %v2564_v43  ;;  %1094 = vperm.xlu1 %1789, %v983_v35   ;;  %v1019_v62 = vsub.f32 %v922_v53, %v2566_v36  ;;  %v927_v35 = vld [vmem:[%s2525_s28 + $0x58] sm:$0xff] }
 0x285   : > { %1324 = vst.msk [vmem:[%s2525_s28 + $0x30] sm:$0xff] %vm1317_vm2, %v2566_v36  ;;  %1356 = vst.msk [vmem:[%s2084_s12 + $0x30] sm:$0xff] %vm1317_vm2, %v2566_v36  ;;  %v961_v5 = vpop.xlane.xlu1 %960  ;;  %1800 = vpow2.f32 %v1037_v49  ;;  %v958_v6 = vpop.xlane.xlu0 %957 }
 0x286   : > { %v1043_v44 = vmul.f32 1.442695, %v1020_v61  ;;  %v989_v42 = vmax.f32 %v925_v47, %v961_v5  ;;  %v1041_v13 = vmul.f32 1.442695, %v1019_v62  ;;  %v2584_v46 = vmax.f32 %v924_v29, %v958_v6  ;;  %v1000_v61 = vld [vmem:[%s2600_s19 + $0x18] sm:$0xff] }
 0x288   : > { %1802 = vpow2.f32 %v1043_v44  ;;  %v1022_v48 = vsub.f32 %v925_v47, %v989_v42  ;;  %1327 = vst.msk [vmem:[%s2525_s28 + $0x48] sm:$0xff] %vm1317_vm2, %v989_v42  ;;  %1359 = vst.msk [vmem:[%s2084_s12 + $0x48] sm:$0xff] %vm1317_vm2, %v989_v42  ;;  %1099 = vperm.xlu1 %1789, %v984_v39   ;;  %1124 = vperm.xlu0 %1788, %v989_v42   ;;  %v1021_v14 = vsub.f32 %v924_v29, %v2584_v46  ;;  %v998_v29 = vld [vmem:[%s2600_s19 + $0x8] sm:$0xff] }
 0x289   : > { %1326 = vst.msk [vmem:[%s2525_s28 + $0x40] sm:$0xff] %vm1317_vm2, %v2584_v46  ;;  %1358 = vst.msk [vmem:[%s2084_s12 + $0x40] sm:$0xff] %vm1317_vm2, %v2584_v46  ;;  %v1791_v55 = vpop.eup %1790  ;;  %v967_v30 = vpop.xlane.xlu1 %966  ;;  %1804 = vpow2.f32 %v1041_v13 }
 0x28a   : > { %v964_v33 = vpop.xlane.xlu0 %963  ;;  %v1793_v56 = vpop.eup %1792  ;;  %v1047_v39 = vmul.f32 1.442695, %v1022_v48  ;;  %v991_v50 = vmax.f32 %v927_v35, %v967_v30  ;;  %v1045_v53 = vmul.f32 1.442695, %v1021_v14  ;;  %v2610_v40 = vmul.f32 %v1791_v55, %v999_v22  ;;  %v930_v48 = vld [vmem:[%s2525_s28 + $0x70] sm:$0xff]  ;;  %v1001_v30 = vld [vmem:[%s2600_s19 + $0x20] sm:$0xff] }
 0x28b   : > { %v2604_v45 = vmax.f32 %v926_v37, %v964_v33  ;;  %v2608_v34 = vmul.f32 %v1793_v56, %v997_v21  ;;  %v1002_v33 = vld [vmem:[%s2600_s19 + $0x28] sm:$0xff] }
 0x28c   : > { %1806 = vpow2.f32 %v1047_v39  ;;  %v1024_v49 = vsub.f32 %v927_v35, %v991_v50  ;;  %1329 = vst.msk [vmem:[%s2525_s28 + $0x58] sm:$0xff] %vm1317_vm2, %v991_v50  ;;  %1361 = vst.msk [vmem:[%s2084_s12 + $0x58] sm:$0xff] %vm1317_vm2, %v991_v50  ;;  %1104 = vperm.xlu1 %1789, %v2549_v41   ;;  %1134 = vperm.xlu0 %1788, %v991_v50  }
 0x28d   : > { %v1023_v47 = vsub.f32 %v926_v37, %v2604_v45  ;;  %1328 = vst.msk [vmem:[%s2525_s28 + $0x50] sm:$0xff] %vm1317_vm2, %v2604_v45  ;;  %1360 = vst.msk [vmem:[%s2084_s12 + $0x50] sm:$0xff] %vm1317_vm2, %v2604_v45  ;;  %v1795_v62 = vpop.eup %1794  ;;  %v973_v5 = vpop.xlane.xlu1 %972  ;;  %1808 = vpow2.f32 %v1045_v53  ;;  %v931_v37 = vld [vmem:[%s2525_s28 + $0x78] sm:$0xff] }
 0x28e   : > { %v970_v6 = vpop.xlane.xlu0 %969  ;;  %v1797_v41 = vpop.eup %1796  ;;  %v1051_v44 = vmul.f32 1.442695, %v1024_v49  ;;  %v993_v42 = vmax.f32 %v929_v54, %v973_v5  ;;  %v2630_v21 = vmul.f32 %v1795_v62, %v1000_v61  ;;  %v1004_v61 = vld [vmem:[%s2600_s19 + $0x38] sm:$0xff] }
 0x28f   : > { %v1049_v13 = vmul.f32 1.442695, %v1023_v47  ;;  %v992_v35 = vmax.f32 %v928_v38, %v970_v6  ;;  %v2628_v14 = vmul.f32 %v1797_v41, %v998_v29  ;;  %v1003_v6 = vld [vmem:[%s2600_s19 + $0x30] sm:$0xff] }
 0x290   : > { %1810 = vpow2.f32 %v1051_v44  ;;  %v1026_v22 = vsub.f32 %v929_v54, %v993_v42  ;;  %1331 = vst.msk [vmem:[%s2525_s28 + $0x68] sm:$0xff] %vm1317_vm2, %v993_v42  ;;  %1363 = vst.msk [vmem:[%s2084_s12 + $0x68] sm:$0xff] %vm1317_vm2, %v993_v42  ;;  %1109 = vperm.xlu1 %1789, %v2566_v36   ;;  %1144 = vperm.xlu0 %1788, %v993_v42  }
 0x291   : > { %v1025_v55 = vsub.f32 %v928_v38, %v992_v35  ;;  %1330 = vst.msk [vmem:[%s2525_s28 + $0x60] sm:$0xff] %vm1317_vm2, %v992_v35  ;;  %1362 = vst.msk [vmem:[%s2084_s12 + $0x60] sm:$0xff] %vm1317_vm2, %v992_v35  ;;  %v1799_v56 = vpop.eup %1798  ;;  %v979_v39 = vpop.xlane.xlu1 %978  ;;  %1812 = vpow2.f32 %v1049_v13 }
 0x292   : > { %v976_v50 = vpop.xlane.xlu0 %975  ;;  %v1801_v53 = vpop.eup %1800  ;;  %v1055_v54 = vmul.f32 1.442695, %v1026_v22  ;;  %v995_v36 = vmax.f32 %v931_v37, %v979_v39  ;;  %v2645_v29 = vmul.f32 %v1799_v56, %v1002_v33  ;;  %v1008_v39 = vld [vmem:[%s2600_s19 + $0x58] sm:$0xff] }
 0x293   : > { %v1053_v38 = vmul.f32 1.442695, %v1025_v55  ;;  %v994_v49 = vmax.f32 %v930_v48, %v976_v50  ;;  %v2643_v47 = vmul.f32 %v1801_v53, %v1001_v30  ;;  %v1007_v50 = vld [vmem:[%s2600_s19 + $0x50] sm:$0xff] }
 0x294   : > { %1814 = vpow2.f32 %v1055_v54  ;;  %v1028_v62 = vsub.f32 %v931_v37, %v995_v36  ;;  %1333 = vst.msk [vmem:[%s2525_s28 + $0x78] sm:$0xff] %vm1317_vm2, %v995_v36  ;;  %1365 = vst.msk [vmem:[%s2084_s12 + $0x78] sm:$0xff] %vm1317_vm2, %v995_v36  ;;  %1114 = vperm.xlu1 %1789, %v2564_v43   ;;  %1154 = vperm.xlu0 %1788, %v995_v36   ;;  %v1006_v43 = vld [vmem:[%s2600_s19 + $0x48] sm:$0xff] }
 0x295   : > { %v1027_v5 = vsub.f32 %v930_v48, %v994_v49  ;;  %1332 = vst.msk [vmem:[%s2525_s28 + $0x70] sm:$0xff] %vm1317_vm2, %v994_v49  ;;  %1364 = vst.msk [vmem:[%s2084_s12 + $0x70] sm:$0xff] %vm1317_vm2, %v994_v49  ;;  %v1803_v41 = vpop.eup %1802  ;;  %1816 = vpow2.f32 %v1053_v38  ;;  %v1005_v48 = vld [vmem:[%s2600_s19 + $0x40] sm:$0xff]  ;;  %v1010_v38 = vld [vmem:[%s2600_s19 + $0x68] sm:$0xff] }
 0x296   : > { %v1805_v44 = vpop.eup %1804  ;;  %v1059_v42 = vmul.f32 1.442695, %v1028_v62  ;;  %v2658_v37 = vmul.f32 %v1803_v41, %v1004_v61  ;;  %v1009_v61 = vld [vmem:[%s2600_s19 + $0x60] sm:$0xff] }
 0x297   : > { %v1057_v13 = vmul.f32 1.442695, %v1027_v5  ;;  %v2660_v22 = vmul.f32 %v1805_v44, %v1003_v6  ;;  %v1012_v44 = vld [vmem:[%s2600_s19 + $0x78] sm:$0xff] }
 0x298   : > { %1818 = vpow2.f32 %v1059_v42  ;;  %1119 = vperm.xlu1 %1789, %v2584_v46   ;;  %v1011_v42 = vld [vmem:[%s2600_s19 + $0x70] sm:$0xff] }
 0x299   : > { %v1807_v55 = vpop.eup %1806  ;;  %1820 = vpow2.f32 %v1057_v13 }
 0x29a   : > { %v1809_v30 = vpop.eup %1808  ;;  %v2665_v33 = vmul.f32 %v1807_v55, %v1006_v43 }
 0x29b   : > { %v2667_v56 = vmul.f32 %v1809_v30, %v1005_v48 }
 0x29c   : > { %1129 = vperm.xlu1 %1789, %v2604_v45  }
 0x29d   : > { %v1811_v53 = vpop.eup %1810 }
 0x29e   : > { %v1813_v54 = vpop.eup %1812  ;;  %v2672_v36 = vmul.f32 %v1811_v53, %v1008_v39 }
 0x29f   : > { %v2674_v46 = vmul.f32 %v1813_v54, %v1007_v50 }
 0x2a0   : > { %1139 = vperm.xlu1 %1789, %v992_v35  }
 0x2a1   : > { %v1815_v62 = vpop.eup %1814 }
 0x2a2   : > { %v1817_v5 = vpop.eup %1816  ;;  %v2678_v6 = vmul.f32 %v1815_v62, %v1010_v38 }
 0x2a3   : > { %v2680_v41 = vmul.f32 %v1817_v5, %v1009_v61 }
 0x2a4   : > { %1149 = vperm.xlu1 %1789, %v994_v49  }
 0x2a5   : > { %v1819_v45 = vpop.eup %1818 }
 0x2a6   : > { %v1821_v13 = vpop.eup %1820  ;;  %v2684_v43 = vmul.f32 %v1819_v45, %v1012_v44 }
 0x2a7   : > { %v2686_v48 = vmul.f32 %v1821_v13, %v1011_v42 }
 0x2f3   : > { %v1080_v55 = vpop.permute.xlu0 %1079 }
 0x2f4   : > { %v1157_v30 = vsub.f32 %v2214_v59, %v1080_v55  ;;  %v1158_v35 = vsub.f32 %v2219_v63, %v1080_v55 }
 0x2f6   : > { %v1189_v39 = vmul.f32 1.442695, %v1157_v30  ;;  %v1191_v50 = vmul.f32 1.442695, %v1158_v35 }
 0x2f7   : > { %v1085_v53 = vpop.permute.xlu1 %1084 }
 0x2f8   : > { %1822 = vpow2.f32 %v1189_v39  ;;  %v1159_v54 = vsub.f32 %v2224_v3, %v1085_v53  ;;  %v1160_v49 = vsub.f32 %v2229_v7, %v1085_v53 }
 0x2f9   : > { %1824 = vpow2.f32 %v1191_v50 }
 0x2fa   : > { %v1193_v38 = vmul.f32 1.442695, %v1159_v54  ;;  %v1195_v61 = vmul.f32 1.442695, %v1160_v49 }
 0x2fb   : > { %v1090_v62 = vpop.permute.xlu1 %1089 }
 0x2fc   : > { %1826 = vpow2.f32 %v1193_v38  ;;  %v1161_v5 = vsub.f32 %v2234_v11, %v1090_v62  ;;  %v1162_v44 = vsub.f32 %v2239_v15, %v1090_v62 }
 0x2fd   : > { %1828 = vpow2.f32 %v1195_v61 }
 0x2fe   : > { %v1197_v59 = vmul.f32 1.442695, %v1161_v5  ;;  %v1199_v63 = vmul.f32 1.442695, %v1162_v44 }
 0x2ff   : > { %v1095_v42 = vpop.permute.xlu1 %1094 }
 0x300   : > { %1830 = vpow2.f32 %v1197_v59  ;;  %v1163_v45 = vsub.f32 %v2244_v19, %v1095_v42  ;;  %v1164_v3 = vsub.f32 %v2249_v23, %v1095_v42 }
 0x301   : > { %1832 = vpow2.f32 %v1199_v63 }
 0x302   : > { %v1201_v7 = vmul.f32 1.442695, %v1163_v45  ;;  %v1203_v13 = vmul.f32 1.442695, %v1164_v3 }
 0x303   : > { %v1100_v55 = vpop.permute.xlu1 %1099  ;;  %v1125_v15 = vpop.permute.xlu0 %1124 }
 0x304   : > { %1834 = vpow2.f32 %v1201_v7  ;;  %v1165_v30 = vsub.f32 %v2254_v27, %v1100_v55  ;;  %v1166_v11 = vsub.f32 %v2259_v31, %v1100_v55  ;;  %v1175_v31 = vsub.f32 %v2226_v4, %v1125_v15 }
 0x305   : > { %v1823_v35 = vpop.eup %1822  ;;  %1836 = vpow2.f32 %v1203_v13 }
 0x306   : > { %v1825_v39 = vpop.eup %1824  ;;  %v1205_v50 = vmul.f32 1.442695, %v1165_v30  ;;  %v1207_v53 = vmul.f32 1.442695, %v1166_v11  ;;  %v1225_v13 = vmul.f32 1.442695, %v1175_v31 }
 0x307   : > { %v1105_v54 = vpop.permute.xlu1 %1104  ;;  %v1253_v49 = vadd.f32 %v1825_v39, %v1823_v35  ;;  %v1135_v5 = vpop.permute.xlu0 %1134 }
 0x308   : > { %1838 = vpow2.f32 %v1205_v50  ;;  %v1167_v19 = vsub.f32 %v2264_v51, %v1105_v54  ;;  %v1168_v23 = vsub.f32 %v2269_v57, %v1105_v54  ;;  %v1176_v57 = vsub.f32 %v2232_v8, %v1125_v15 }
 0x309   : > { %v1827_v38 = vpop.eup %1826  ;;  %1840 = vpow2.f32 %v1207_v53  ;;  %1254 = vadd.xlane.f32.xlu1 %v1253_v49  ;;  %v1179_v55 = vsub.f32 %v2246_v20, %v1135_v5  ;;  %v1180_v15 = vsub.f32 %v2252_v24, %v1135_v5 }
 0x30a   : > { %v1829_v61 = vpop.eup %1828  ;;  %v1209_v27 = vmul.f32 1.442695, %v1167_v19  ;;  %v1211_v62 = vmul.f32 1.442695, %v1168_v23  ;;  %v1227_v50 = vmul.f32 1.442695, %v1176_v57 }
 0x30b   : > { %v1110_v44 = vpop.permute.xlu1 %1109  ;;  %v1256_v59 = vadd.f32 %v1829_v61, %v1827_v38  ;;  %v1233_v54 = vmul.f32 1.442695, %v1179_v55 }
 0x30c   : > { %1842 = vpow2.f32 %v1209_v27  ;;  %v1169_v63 = vsub.f32 %v2274_v1, %v1110_v44  ;;  %v1170_v42 = vsub.f32 %v2279_v9, %v1110_v44  ;;  %v1145_v9 = vpop.permute.xlu0 %1144 }
 0x30d   : > { %v1831_v45 = vpop.eup %1830  ;;  %1844 = vpow2.f32 %v1211_v62  ;;  %1257 = vadd.xlane.f32.xlu0 %v1256_v59  ;;  %v1183_v38 = vsub.f32 %v2266_v52, %v1145_v9  ;;  %v1235_v62 = vmul.f32 1.442695, %v1180_v15  ;;  %v1184_v24 = vsub.f32 %v2272_v58, %v1145_v9 }
 0x30e   : > { %v1833_v51 = vpop.eup %1832  ;;  %v1213_v3 = vmul.f32 1.442695, %v1169_v63  ;;  %v1215_v7 = vmul.f32 1.442695, %v1170_v42 }
 0x30f   : > { %v1115_v4 = vpop.permute.xlu1 %1114  ;;  %v1259_v30 = vadd.f32 %v1833_v51, %v1831_v45  ;;  %v1241_v42 = vmul.f32 1.442695, %v1183_v38  ;;  %v1243_v57 = vmul.f32 1.442695, %v1184_v24 }
 0x310   : > { %1846 = vpow2.f32 %v1213_v3  ;;  %v1171_v11 = vsub.f32 %v2284_v17, %v1115_v4  ;;  %v1172_v1 = vsub.f32 %v2289_v25, %v1115_v4  ;;  %v1155_v31 = vpop.permute.xlu0 %1154 }
 0x311   : > { %v1835_v35 = vpop.eup %1834  ;;  %1848 = vpow2.f32 %v1215_v7  ;;  %1260 = vadd.xlane.f32.xlu0 %v1259_v30  ;;  %v1187_v52 = vsub.f32 %v2286_v18, %v1155_v31  ;;  %v1188_v58 = vsub.f32 %v2292_v26, %v1155_v31 }
 0x312   : > { %v1837_v39 = vpop.eup %1836  ;;  %v1217_v53 = vmul.f32 1.442695, %v1171_v11  ;;  %v1219_v8 = vmul.f32 1.442695, %v1172_v1  ;;  %1850 = vpow2.f32 %v1225_v13 }
 0x313   : > { %v1120_v20 = vpop.permute.xlu1 %1119  ;;  %v1262_v49 = vadd.f32 %v1837_v39, %v1835_v35  ;;  %v1249_v4 = vmul.f32 1.442695, %v1187_v52  ;;  %v1251_v11 = vmul.f32 1.442695, %v1188_v58 }
 0x314   : > { %1852 = vpow2.f32 %v1217_v53  ;;  %v1173_v19 = vsub.f32 %v2216_v60, %v1120_v20  ;;  %v1174_v17 = vsub.f32 %v2222_v0, %v1120_v20 }
 0x315   : > { %v1839_v25 = vpop.eup %1838  ;;  %1854 = vpow2.f32 %v1219_v8  ;;  %1263 = vadd.xlane.f32.xlu1 %v1262_v49 }
 0x316   : > { %v1841_v23 = vpop.eup %1840  ;;  %1856 = vpow2.f32 %v1227_v50  ;;  %v1221_v61 = vmul.f32 1.442695, %v1173_v19  ;;  %v1223_v27 = vmul.f32 1.442695, %v1174_v17 }
 0x317   : > { %1858 = vpow2.f32 %v1233_v54  ;;  %v1130_v5 = vpop.permute.xlu1 %1129  ;;  %v1265_v44 = vadd.f32 %v1841_v23, %v1839_v25 }
 0x318   : > { %1860 = vpow2.f32 %v1221_v61  ;;  %v1177_v60 = vsub.f32 %v2236_v12, %v1130_v5  ;;  %v1178_v0 = vsub.f32 %v2242_v16, %v1130_v5 }
 0x319   : > { %v1843_v59 = vpop.eup %1842  ;;  %1862 = vpow2.f32 %v1223_v27  ;;  %1266 = vadd.xlane.f32.xlu0 %v1265_v44 }
 0x31a   : > { %v1845_v63 = vpop.eup %1844  ;;  %v1229_v45 = vmul.f32 1.442695, %v1177_v60  ;;  %v1231_v51 = vmul.f32 1.442695, %v1178_v0  ;;  %1864 = vpow2.f32 %v1235_v62 }
 0x31b   : > { %v1140_v3 = vpop.permute.xlu1 %1139  ;;  %v1268_v7 = vadd.f32 %v1845_v63, %v1843_v59 }
 0x31c   : > { %1866 = vpow2.f32 %v1229_v45  ;;  %v1181_v12 = vsub.f32 %v2256_v28, %v1140_v3  ;;  %v1182_v16 = vsub.f32 %v2262_v32, %v1140_v3 }
 0x31d   : > { %v1847_v13 = vpop.eup %1846  ;;  %1868 = vpow2.f32 %v1231_v51  ;;  %1269 = vadd.xlane.f32.xlu1 %v1268_v7 }
 0x31e   : > { %v1849_v55 = vpop.eup %1848  ;;  %1870 = vpow2.f32 %v1241_v42  ;;  %v1237_v18 = vmul.f32 1.442695, %v1181_v12  ;;  %v1239_v30 = vmul.f32 1.442695, %v1182_v16 }
 0x31f   : > { %1872 = vpow2.f32 %v1243_v57  ;;  %v1150_v1 = vpop.permute.xlu1 %1149  ;;  %v1271_v35 = vadd.f32 %v1849_v55, %v1847_v13  ;;  %v1851_v26 = vpop.eup %1850 }
 0x320   : > { %1874 = vpow2.f32 %v1237_v18  ;;  %v1185_v9 = vsub.f32 %v2276_v2, %v1150_v1  ;;  %v1186_v28 = vsub.f32 %v2282_v10, %v1150_v1 }
 0x321   : > { %v1853_v39 = vpop.eup %1852  ;;  %1876 = vpow2.f32 %v1239_v30  ;;  %1272 = vadd.xlane.f32.xlu0 %v1271_v35 }
 0x322   : > { %v1855_v32 = vpop.eup %1854  ;;  %1878 = vpow2.f32 %v1249_v4  ;;  %v1245_v50 = vmul.f32 1.442695, %v1185_v9  ;;  %v1247_v53 = vmul.f32 1.442695, %v1186_v28 }
 0x323   : > { %v1857_v8 = vpop.eup %1856  ;;  %1880 = vpow2.f32 %v1251_v11  ;;  %v1274_v15 = vadd.f32 %v1855_v32, %v1853_v39 }
 0x324   : > { %v1859_v54 = vpop.eup %1858  ;;  %1882 = vpow2.f32 %v1245_v50  ;;  %v1280_v2 = vadd.f32 %v1857_v8, %v1851_v26 }
 0x325   : > { %v1861_v20 = vpop.eup %1860  ;;  %1884 = vpow2.f32 %v1247_v53  ;;  %1275 = vadd.xlane.f32.xlu1 %v1274_v15 }
 0x326   : > { %v1863_v49 = vpop.eup %1862 }
 0x327   : > { %v1277_v19 = vadd.f32 %v1863_v49, %v1861_v20  ;;  %v1865_v17 = vpop.eup %1864 }
 0x328   : > { %v1286_v61 = vadd.f32 %v1865_v17, %v1859_v54 }
 0x329   : > { %v1867_v10 = vpop.eup %1866  ;;  %1278 = vadd.xlane.f32.xlu0 %v1277_v19  ;;  %1281 = vadd.xlane.f32.xlu1 %v1280_v2 }
 0x32a   : > { %v1869_v25 = vpop.eup %1868 }
 0x32b   : > { %v1871_v23 = vpop.eup %1870  ;;  %v1283_v38 = vadd.f32 %v1869_v25, %v1867_v10 }
 0x32c   : > { %v1873_v27 = vpop.eup %1872 }
 0x32d   : > { %v1875_v62 = vpop.eup %1874  ;;  %1284 = vadd.xlane.f32.xlu0 %v1283_v38  ;;  %1287 = vadd.xlane.f32.xlu1 %v1286_v61  ;;  %v1292_v44 = vadd.f32 %v1873_v27, %v1871_v23 }
 0x32e   : > { %v1877_v24 = vpop.eup %1876 }
 0x32f   : > { %v1879_v31 = vpop.eup %1878  ;;  %v1289_v5 = vadd.f32 %v1877_v24, %v1875_v62 }
 0x330   : > { %v1881_v60 = vpop.eup %1880 }
 0x331   : > { %v1883_v0 = vpop.eup %1882  ;;  %1290 = vadd.xlane.f32.xlu0 %v1289_v5  ;;  %1293 = vadd.xlane.f32.xlu1 %v1292_v44  ;;  %v1298_v42 = vadd.f32 %v1881_v60, %v1879_v31 }
 0x332   : > { %v1885_v59 = vpop.eup %1884 }
 0x333   : > { %v1295_v63 = vadd.f32 %v1885_v59, %v1883_v0 }
 0x335   : > { %1296 = vadd.xlane.f32.xlu0 %v1295_v63  ;;  %1299 = vadd.xlane.f32.xlu1 %v1298_v42 }
 0x392   : > { %v1255_v52 = vpop.xlane.xlu1 %1254 }
 0x393   : > { %v1301_v45 = vadd.f32 %v1255_v52, %v2608_v34 }
 0x395   : > { %1334 = vst.msk [vmem:[%s2600_s19] sm:$0xff] %vm1317_vm2, %v1301_v45  ;;  %1366 = vst.msk [vmem:[%s2091_s16] sm:$0xff] %vm1317_vm2, %v1301_v45 }
 0x396   : > { %v1258_v51 = vpop.xlane.xlu0 %1257 }
 0x397   : > { %v1302_v57 = vadd.f32 %v1258_v51, %v2628_v14 }
 0x399   : > { %1335 = vst.msk [vmem:[%s2600_s19 + $0x8] sm:$0xff] %vm1317_vm2, %v1302_v57  ;;  %1367 = vst.msk [vmem:[%s2091_s16 + $0x8] sm:$0xff] %vm1317_vm2, %v1302_v57 }
 0x39a   : > { %v1261_v58 = vpop.xlane.xlu0 %1260 }
 0x39b   : > { %v1303_v3 = vadd.f32 %v1261_v58, %v2610_v40 }
 0x39d   : > { %1336 = vst.msk [vmem:[%s2600_s19 + $0x10] sm:$0xff] %vm1317_vm2, %v1303_v3  ;;  %1368 = vst.msk [vmem:[%s2091_s16 + $0x10] sm:$0xff] %vm1317_vm2, %v1303_v3 }
 0x39e   : > { %v1264_v34 = vpop.xlane.xlu1 %1263 }
 0x39f   : > { %v1304_v7 = vadd.f32 %v1264_v34, %v2630_v21 }
 0x3a1   : > { %1337 = vst.msk [vmem:[%s2600_s19 + $0x18] sm:$0xff] %vm1317_vm2, %v1304_v7  ;;  %1369 = vst.msk [vmem:[%s2091_s16 + $0x18] sm:$0xff] %vm1317_vm2, %v1304_v7 }
 0x3a2   : > { %v1267_v14 = vpop.xlane.xlu0 %1266 }
 0x3a3   : > { %v1305_v12 = vadd.f32 %v1267_v14, %v2643_v47 }
 0x3a5   : > { %1338 = vst.msk [vmem:[%s2600_s19 + $0x20] sm:$0xff] %vm1317_vm2, %v1305_v12  ;;  %1370 = vst.msk [vmem:[%s2091_s16 + $0x20] sm:$0xff] %vm1317_vm2, %v1305_v12 }
 0x3a6   : > { %v1270_v40 = vpop.xlane.xlu1 %1269 }
 0x3a7   : > { %v1306_v16 = vadd.f32 %v1270_v40, %v2645_v29 }
 0x3a9   : > { %1339 = vst.msk [vmem:[%s2600_s19 + $0x28] sm:$0xff] %vm1317_vm2, %v1306_v16  ;;  %1371 = vst.msk [vmem:[%s2091_s16 + $0x28] sm:$0xff] %vm1317_vm2, %v1306_v16 }
 0x3aa   : > { %v1273_v21 = vpop.xlane.xlu0 %1272 }
 0x3ab   : > { %v1307_v13 = vadd.f32 %v1273_v21, %v2660_v22 }
 0x3ad   : > { %1340 = vst.msk [vmem:[%s2600_s19 + $0x30] sm:$0xff] %vm1317_vm2, %v1307_v13  ;;  %1372 = vst.msk [vmem:[%s2091_s16 + $0x30] sm:$0xff] %vm1317_vm2, %v1307_v13 }
 0x3ae   : > { %v1276_v47 = vpop.xlane.xlu1 %1275 }
 0x3af   : > { %v1308_v55 = vadd.f32 %v1276_v47, %v2658_v37 }
 0x3b1   : > { %1341 = vst.msk [vmem:[%s2600_s19 + $0x38] sm:$0xff] %vm1317_vm2, %v1308_v55  ;;  %1373 = vst.msk [vmem:[%s2091_s16 + $0x38] sm:$0xff] %vm1317_vm2, %v1308_v55 }
 0x3b2   : > { %v1282_v29 = vpop.xlane.xlu1 %1281  ;;  %v1279_v4 = vpop.xlane.xlu0 %1278 }
 0x3b3   : > { %v1310_v18 = vadd.f32 %v1282_v29, %v2665_v33  ;;  %v1309_v22 = vadd.f32 %v1279_v4, %v2667_v56 }
 0x3b5   : > { %1343 = vst.msk [vmem:[%s2600_s19 + $0x48] sm:$0xff] %vm1317_vm2, %v1310_v18  ;;  %1375 = vst.msk [vmem:[%s2091_s16 + $0x48] sm:$0xff] %vm1317_vm2, %v1310_v18 }
 0x3b6   : > { %1342 = vst.msk [vmem:[%s2600_s19 + $0x40] sm:$0xff] %vm1317_vm2, %v1309_v22  ;;  %1374 = vst.msk [vmem:[%s2091_s16 + $0x40] sm:$0xff] %vm1317_vm2, %v1309_v22  ;;  %v1288_v37 = vpop.xlane.xlu1 %1287  ;;  %v1285_v30 = vpop.xlane.xlu0 %1284 }
 0x3b7   : > { %v1312_v11 = vadd.f32 %v1288_v37, %v2672_v36  ;;  %v1311_v33 = vadd.f32 %v1285_v30, %v2674_v46 }
 0x3b9   : > { %1345 = vst.msk [vmem:[%s2600_s19 + $0x58] sm:$0xff] %vm1317_vm2, %v1312_v11  ;;  %1377 = vst.msk [vmem:[%s2091_s16 + $0x58] sm:$0xff] %vm1317_vm2, %v1312_v11 }
 0x3ba   : > { %1344 = vst.msk [vmem:[%s2600_s19 + $0x50] sm:$0xff] %vm1317_vm2, %v1311_v33  ;;  %1376 = vst.msk [vmem:[%s2091_s16 + $0x50] sm:$0xff] %vm1317_vm2, %v1311_v33  ;;  %v1294_v56 = vpop.xlane.xlu1 %1293  ;;  %v1291_v1 = vpop.xlane.xlu0 %1290 }
 0x3bb   : > { %v1314_v35 = vadd.f32 %v1294_v56, %v2678_v6  ;;  %v1313_v36 = vadd.f32 %v1291_v1, %v2680_v41 }
 0x3bd   : > { %1347 = vst.msk [vmem:[%s2600_s19 + $0x68] sm:$0xff] %vm1317_vm2, %v1314_v35  ;;  %1379 = vst.msk [vmem:[%s2091_s16 + $0x68] sm:$0xff] %vm1317_vm2, %v1314_v35 }
 0x3be   : > { %1346 = vst.msk [vmem:[%s2600_s19 + $0x60] sm:$0xff] %vm1317_vm2, %v1313_v36  ;;  %1378 = vst.msk [vmem:[%s2091_s16 + $0x60] sm:$0xff] %vm1317_vm2, %v1313_v36  ;;  %v1300_v46 = vpop.xlane.xlu1 %1299  ;;  %v1297_v26 = vpop.xlane.xlu0 %1296 }
 0x3bf   : > { %v1316_v9 = vadd.f32 %v1300_v46, %v2684_v43  ;;  %v1315_v28 = vadd.f32 %v1297_v26, %v2686_v48 }
 0x3c1   : > { %1349 = vst.msk [vmem:[%s2600_s19 + $0x78] sm:$0xff] %vm1317_vm2, %v1316_v9  ;;  %1381 = vst.msk [vmem:[%s2091_s16 + $0x78] sm:$0xff] %vm1317_vm2, %v1316_v9 }
 0x3c2   : > { %1348 = vst.msk [vmem:[%s2600_s19 + $0x70] sm:$0xff] %vm1317_vm2, %v1315_v28  ;;  %1380 = vst.msk [vmem:[%s2091_s16 + $0x70] sm:$0xff] %vm1317_vm2, %v1315_v28 }
 0x3c3 PF: > { %s20_s9 = sadd.s32 1, %s1940_s9   ;;  %s2829_s26 = smov %s1920_s27 }
 0x3c4   : > { %p17_p13 = scmp.ge.s32.totalorder %s20_s9, 6   ;;  %s2830_s27 = smov %s2038_s13 }
 0x3c5   : > { %s2831_s28 = smov %s1932_s30  ;;  %s2832_s29 = smov %s1936_s8 }
 0x3c6   : > { %s2833_s30 = smov %s2836_s4  ;;  %s2834_s8 = smov %s2840_s10 }
 0x3c7   :  { %19 = sbr.rel (!%p17_p13) target bundleno = 7 (0x7), region = 138 }

</bundles_post_ra>
